<compile_context>
chip_gen: v7x
topology: tpu7x:2x2x1
jax: 0.10.0
libtpu: 0.0.40
codegen_flags: <defaults>
</compile_context>

<pallas_src>
import functools
import math

import jax
import jax.numpy as jnp
from jax import lax
from jax.experimental import pallas as pl
from jax.experimental.pallas import tpu as pltpu

_LANE = 128          # TPU lane width (last dim)
_SUBLANE = 16        # bf16-friendly sublane multiple for the batch dim
_NEG_BIAS = -1e9     # bias in padded gate columns -> never spikes -> padded h/c stay 0


def _round_up(v, m):
    return ((v + m - 1) // m) * m


# --------------------------------------------------------------------------------------
# Kernel
# --------------------------------------------------------------------------------------
def _spiking_lstm_layer_kernel(x_ref, h0_ref, c0_ref, wih_ref, whh_ref, b_ref,
                               y_ref, hf_ref, cf_ref, h_sc, c_sc,
                               *, hidden_p, chunk_t, seq_len):
    """One stacked SpikingLSTM layer over a chunk of `chunk_t` timesteps.

    grid = (batch_tiles [parallel], time_chunks [arbitrary]).  The recurrence runs fully
    in-kernel; h/c are carried in VMEM scratch across time chunks.  Weights/bias are
    resident (constant index_map) and hoisted out of the inner loop.
    """
    tc = pl.program_id(1)
    bt = h0_ref.shape[0]
    hp = hidden_p

    @pl.when(tc == 0)
    def _():
        h_sc[...] = h0_ref[...]
        c_sc[...] = c0_ref[...]

    # Loop invariants hoisted out of the timestep loop.
    wih = wih_ref[...]                                    # [InP, 4Hp] bf16
    whh = whh_ref[...]                                    # [Hp,  4Hp] bf16
    bias = jnp.broadcast_to(b_ref[...], (bt, 4 * hp))     # [Bt,  4Hp] f32

    t_base = tc * chunk_t
    needs_mask = (seq_len % chunk_t) != 0

    def step(i, carry):
        h, c = carry                                      # f32 [Bt, Hp]
        x_t = x_ref[i]                                    # bf16 [Bt, InP]
        gates = (jnp.dot(x_t, wih, preferred_element_type=jnp.float32)
                 + jnp.dot(h.astype(jnp.bfloat16), whh,
                           preferred_element_type=jnp.float32)
                 + bias)                                  # f32 [Bt, 4Hp]
        spike = (gates >= 0.0).astype(jnp.float32)        # Heaviside surrogate forward
        i_g = spike[:, 0 * hp:1 * hp]
        f_g = spike[:, 1 * hp:2 * hp]
        g_g = spike[:, 2 * hp:3 * hp]
        o_g = spike[:, 3 * hp:4 * hp]
        c_new = c * f_g + i_g * g_g
        h_new = c_new * o_g
        if needs_mask:                                    # freeze state on padded timesteps
            keep = ((t_base + i) < seq_len).astype(jnp.float32)
            c_new = keep * c_new + (1.0 - keep) * c
            h_new = keep * h_new + (1.0 - keep) * h
        y_ref[i] = h_new.astype(y_ref.dtype)
        return h_new, c_new

    h_fin, c_fin = lax.fori_loop(0, chunk_t, step, (h_sc[...], c_sc[...]),
                                 unroll=chunk_t <= 8)
    h_sc[...] = h_fin
    c_sc[...] = c_fin

    # Final-state outputs written once, on the last time chunk only.
    @pl.when(tc == pl.num_programs(1) - 1)
    def _():
        hf_ref[...] = h_fin
        cf_ref[...] = c_fin


def _spiking_lstm_layer(x_p, h0_p, c0_p, w_ih_p, w_hh_p, b_p, *, seq_len,
                        chunk_t, batch_tile):
    """x_p: [Tpad, Bp, InP] bf16; h0/c0: [Bp, Hp] f32; weights: [*, 4Hp] bf16; b: [1, 4Hp] f32."""
    t_pad, b_pad, in_p = x_p.shape
    h_p = h0_p.shape[-1]
    assert t_pad % chunk_t == 0 and b_pad % batch_tile == 0
    n_b = b_pad // batch_tile
    n_tc = t_pad // chunk_t
    kernel = functools.partial(_spiking_lstm_layer_kernel, hidden_p=h_p,
                               chunk_t=chunk_t, seq_len=seq_len)
    return pl.pallas_call(
        kernel,
        out_shape=(jax.ShapeDtypeStruct((t_pad, b_pad, h_p), jnp.bfloat16),
                   jax.ShapeDtypeStruct((b_pad, h_p), jnp.float32),
                   jax.ShapeDtypeStruct((b_pad, h_p), jnp.float32)),
        grid_spec=pltpu.PrefetchScalarGridSpec(
            num_scalar_prefetch=0,
            grid=(n_b, n_tc),
            in_specs=[
                pl.BlockSpec((chunk_t, batch_tile, in_p), lambda b, t: (t, b, 0)),
                pl.BlockSpec((batch_tile, h_p), lambda b, t: (b, 0)),
                pl.BlockSpec((batch_tile, h_p), lambda b, t: (b, 0)),
                pl.BlockSpec((in_p, 4 * h_p), lambda b, t: (0, 0)),
                pl.BlockSpec((h_p, 4 * h_p), lambda b, t: (0, 0)),
                pl.BlockSpec((1, 4 * h_p), lambda b, t: (0, 0)),
            ],
            out_specs=[
                pl.BlockSpec((chunk_t, batch_tile, h_p), lambda b, t: (t, b, 0)),
                pl.BlockSpec((batch_tile, h_p), lambda b, t: (b, 0)),
                pl.BlockSpec((batch_tile, h_p), lambda b, t: (b, 0)),
            ],
            scratch_shapes=[pltpu.VMEM((batch_tile, h_p), jnp.float32),
                            pltpu.VMEM((batch_tile, h_p), jnp.float32)]),
        compiler_params=pltpu.CompilerParams(
            # Batch tiles may split across TensorCores (v7x); the time recurrence is
            # sequential ("arbitrary").  Raise vmem_limit_bytes further for large H.
            dimension_semantics=("parallel", "arbitrary"),
            vmem_limit_bytes=32 * 1024 * 1024),
    )(x_p, h0_p, c0_p, w_ih_p, w_hh_p, b_p)


# --------------------------------------------------------------------------------------
# Parameter init / one-time packing
# --------------------------------------------------------------------------------------
def init_spiking_lstm_params(key, input_size, hidden_size, num_layers, bias=True):
    """Matches SpikingRNNCellBase: U(-1/sqrt(H), 1/sqrt(H)) for all params (PyTorch layout)."""
    k = 1.0 / math.sqrt(hidden_size)
    params = []
    for layer in range(num_layers):
        in_sz = input_size if layer == 0 else hidden_size
        key, k1, k2, k3, k4 = jax.random.split(key, 5)
        params.append({
            "w_ih": jax.random.uniform(k1, (4 * hidden_size, in_sz), jnp.float32, -k, k),
            "w_hh": jax.random.uniform(k2, (4 * hidden_size, hidden_size), jnp.float32, -k, k),
            "b_ih": (jax.random.uniform(k3, (4 * hidden_size,), jnp.float32, -k, k)
                     if bias else jnp.zeros((4 * hidden_size,), jnp.float32)),
            "b_hh": (jax.random.uniform(k4, (4 * hidden_size,), jnp.float32, -k, k)
                     if bias else jnp.zeros((4 * hidden_size,), jnp.float32)),
        })
    return params


def _pack_gate_weight(w, in_p, h_p):
    """w: [4H, In] (PyTorch layout) -> padded, transposed, bf16 [in_p, 4*h_p]; per-gate blocks."""
    four_h, in_sz = w.shape
    h = four_h // 4
    w_t = jnp.transpose(w).astype(jnp.float32)            # [In, 4H]
    out = jnp.zeros((in_p, 4 * h_p), jnp.float32)
    for g in range(4):
        out = out.at[:in_sz, g * h_p:g * h_p + h].set(w_t[:, g * h:(g + 1) * h])
    return out.astype(jnp.bfloat16)


def _pack_gate_bias(b_ih, b_hh, h_p):
    """Pre-fold b_ih + b_hh; padded gate columns get a large negative bias (never spike)."""
    four_h = b_ih.shape[0]
    h = four_h // 4
    b = (b_ih + b_hh).astype(jnp.float32)
    out = jnp.full((1, 4 * h_p), _NEG_BIAS, jnp.float32)
    for g in range(4):
        out = out.at[0, g * h_p:g * h_p + h].set(b[g * h:(g + 1) * h])
    return out


def pack_spiking_lstm_params(params, input_size, hidden_size):
    """One-time packing (transpose + lane-pad + bias fold + bf16 cast)."""
    h_p = _round_up(hidden_size, _LANE)
    in_p0 = _round_up(input_size, _LANE)
    layers = []
    for li, p in enumerate(params):
        in_p = in_p0 if li == 0 else h_p
        layers.append({
            "w_ih": _pack_gate_weight(p["w_ih"], in_p, h_p),
            "w_hh": _pack_gate_weight(p["w_hh"], h_p, h_p),
            "b": _pack_gate_bias(p["b_ih"], p["b_hh"], h_p),
        })
    return {"layers": layers, "hidden_size": hidden_size, "hidden_p": h_p,
            "input_size": input_size, "input_p": in_p0}


# --------------------------------------------------------------------------------------
# Forward (SpikingRNNBase.forward, unidirectional, states_num()==2, eval mode)
# --------------------------------------------------------------------------------------
def spiking_rnn_forward(packed, x, states=None, *, chunk_t=32):
    """Returns (y, (h_final, c_final)):
       y: [T, B, H]; h_final/c_final: [1, L, B, H] (mimics torch.split(states_list, 1, 0))."""
    T, B, in_sz = x.shape
    H = packed["hidden_size"]
    Hp = packed["hidden_p"]
    InP = packed["input_p"]
    layers = packed["layers"]
    L = len(layers)

    tt = min(chunk_t, T)
    t_pad = _round_up(T, tt)
    b_pad = _round_up(B, _SUBLANE)
    b_tile = b_pad if b_pad < 256 else b_pad // 2         # 2 tiles -> v7x megacore split

    x_p = jnp.pad(x.astype(jnp.bfloat16),
                  ((0, t_pad - T), (0, b_pad - B), (0, InP - in_sz)))

    if states is None:
        h0_p = jnp.zeros((L, b_pad, Hp), jnp.float32)
        c0_p = jnp.zeros((L, b_pad, Hp), jnp.float32)
    else:
        h0, c0 = states
        h0_p = jnp.pad(h0.astype(jnp.float32), ((0, 0), (0, b_pad - B), (0, Hp - H)))
        c0_p = jnp.pad(c0.astype(jnp.float32), ((0, 0), (0, b_pad - B), (0, Hp - H)))

    y_p = x_p
    hs, cs = [], []
    for li in range(L):
        lp = layers[li]
        y_p, hf, cf = _spiking_lstm_layer(
            y_p, h0_p[li], c0_p[li], lp["w_ih"], lp["w_hh"], lp["b"],
            seq_len=T, chunk_t=tt, batch_tile=b_tile)
        hs.append(hf[:B, :H])
        cs.append(cf[:B, :H])

    y = y_p[:T, :B, :H].astype(jnp.float32)
    h_final = jnp.stack(hs)
    c_final = jnp.stack(cs)
    return y, (h_final[None], c_final[None])


# --------------------------------------------------------------------------------------
# Pure-JAX reference (mirrors the PyTorch time-major loop and the kernel's bf16 numerics)
# --------------------------------------------------------------------------------------
def spiking_rnn_forward_ref(params, x):
    T, B, _ = x.shape
    L = len(params)
    H = params[0]["w_hh"].shape[1]
    bf = jnp.bfloat16
    h = jnp.zeros((L, B, H), jnp.float32)
    c = jnp.zeros((L, B, H), jnp.float32)
    ys = []
    for t in range(T):
        inp = x[t]
        new_h, new_c = [], []
        for layer in range(L):
            p = params[layer]
            gates = (jnp.dot(inp.astype(bf), jnp.transpose(p["w_ih"]).astype(bf),
                             preferred_element_type=jnp.float32)
                     + jnp.dot(h[layer].astype(bf), jnp.transpose(p["w_hh"]).astype(bf),
                               preferred_element_type=jnp.float32)
                     + (p["b_ih"] + p["b_hh"]))
            spike = (gates >= 0.0).astype(jnp.float32)
            i_g, f_g, g_g, o_g = jnp.split(spike, 4, axis=1)
            c_l = c[layer] * f_g + i_g * g_g
            h_l = c_l * o_g
            new_h.append(h_l)
            new_c.append(c_l)
            inp = h_l
        h = jnp.stack(new_h)
        c = jnp.stack(new_c)
        ys.append(h[-1])
    return jnp.stack(ys), (h[None], c[None])


if __name__ == "__main__":
    T, B, input_size, hidden_size, num_layers = 8, 2, 4, 32, 2

    key = jax.random.PRNGKey(0)
    key, kx = jax.random.split(key)
    x = jax.random.normal(kx, (T, B, input_size), jnp.float32)
    params = init_spiking_lstm_params(key, input_size, hidden_size, num_layers, bias=True)
    packed = pack_spiking_lstm_params(params, input_size, hidden_size)

    y, (h_f, c_f) = spiking_rnn_forward(packed, x)
    jax.block_until_ready(y)
    jax.block_until_ready(h_f)
    jax.block_until_ready(c_f)

    y_ref, (h_ref, c_ref) = spiking_rnn_forward_ref(params, x)
    assert y.shape == (T, B, hidden_size)
    assert h_f.shape == (1, num_layers, B, hidden_size)
    assert c_f.shape == (1, num_layers, B, hidden_size)
    assert jnp.allclose(y, y_ref, atol=1e-4), "output mismatch"
    assert jnp.allclose(h_f, h_ref, atol=1e-4), "h state mismatch"
    assert jnp.allclose(c_f, c_ref, atol=1e-4), "c state mismatch"

    print("KERNEL_OK")
</pallas_src>

<mosaic_0001>
module attributes {stable_mosaic.version = 11 : i64} {
  func.func @_spiking_lstm_layer_kernel(%arg0: i32, %arg1: i32, %arg2: memref<8x16x128xbf16, #tpu.memory_space<vmem>>, %arg3: memref<16x128xf32, #tpu.memory_space<vmem>>, %arg4: memref<16x128xf32, #tpu.memory_space<vmem>>, %arg5: memref<128x512xbf16, #tpu.memory_space<vmem>>, %arg6: memref<128x512xbf16, #tpu.memory_space<vmem>>, %arg7: memref<1x512xf32, #tpu.memory_space<vmem>>, %arg8: memref<8x16x128xbf16, #tpu.memory_space<vmem>>, %arg9: memref<16x128xf32, #tpu.memory_space<vmem>>, %arg10: memref<16x128xf32, #tpu.memory_space<vmem>>, %arg11: memref<16x128xf32, #tpu.memory_space<vmem>>, %arg12: memref<16x128xf32, #tpu.memory_space<vmem>>) attributes {dimension_semantics = [#tpu.dimension_semantics<parallel>, #tpu.dimension_semantics<arbitrary>], iteration_bounds = array<i64: 1, 1>, scalar_prefetch = 0 : i64, scratch_operands = 2 : i64, tpu.core_type = #tpu.core_type<tc>, window_params = [{transform_indices = @transform_0, window_bounds = array<i64: 8, 16, 128>}, {transform_indices = @transform_1, window_bounds = array<i64: 16, 128>}, {transform_indices = @transform_2, window_bounds = array<i64: 16, 128>}, {pipeline_mode = #tpu.pipeline_mode<synchronous>, transform_indices = @transform_3, window_bounds = array<i64: 128, 512>}, {pipeline_mode = #tpu.pipeline_mode<synchronous>, transform_indices = @transform_4, window_bounds = array<i64: 128, 512>}, {pipeline_mode = #tpu.pipeline_mode<synchronous>, transform_indices = @transform_5, window_bounds = array<i64: 1, 512>}, {transform_indices = @transform_6, window_bounds = array<i64: 8, 16, 128>}, {transform_indices = @transform_7, window_bounds = array<i64: 16, 128>}, {transform_indices = @transform_8, window_bounds = array<i64: 16, 128>}]} {
    %c0_i32 = arith.constant 0 : i32
    %0 = arith.cmpi eq, %arg1, %c0_i32 : i32
    %1 = arith.extui %0 : i1 to i32
    %c0_i32_0 = arith.constant 0 : i32
    %2 = arith.cmpi ne, %1, %c0_i32_0 : i32
    scf.if %2 {
      %c0_72 = arith.constant 0 : index
      %c0_73 = arith.constant 0 : index
      %215 = vector.load %arg3[%c0_72, %c0_73] : memref<16x128xf32, #tpu.memory_space<vmem>>, vector<16x128xf32>
      %c0_74 = arith.constant 0 : index
      %c0_75 = arith.constant 0 : index
      %216 = vector.load %arg11[%c0_74, %c0_75] : memref<16x128xf32, #tpu.memory_space<vmem>>, vector<16x128xf32>
      tpu.vector_store %arg11[%c0_74, %c0_75], %215 {strides = array<i32>} : memref<16x128xf32, #tpu.memory_space<vmem>>, vector<16x128xf32>,
      %c0_76 = arith.constant 0 : index
      %c0_77 = arith.constant 0 : index
      %217 = vector.load %arg4[%c0_76, %c0_77] : memref<16x128xf32, #tpu.memory_space<vmem>>, vector<16x128xf32>
      %c0_78 = arith.constant 0 : index
      %c0_79 = arith.constant 0 : index
      %218 = vector.load %arg12[%c0_78, %c0_79] : memref<16x128xf32, #tpu.memory_space<vmem>>, vector<16x128xf32>
      tpu.vector_store %arg12[%c0_78, %c0_79], %217 {strides = array<i32>} : memref<16x128xf32, #tpu.memory_space<vmem>>, vector<16x128xf32>,
    } else {
    }
    %c0 = arith.constant 0 : index
    %c0_1 = arith.constant 0 : index
    %3 = vector.load %arg5[%c0, %c0_1] : memref<128x512xbf16, #tpu.memory_space<vmem>>, vector<128x512xbf16>
    %c0_2 = arith.constant 0 : index
    %c0_3 = arith.constant 0 : index
    %4 = vector.load %arg6[%c0_2, %c0_3] : memref<128x512xbf16, #tpu.memory_space<vmem>>, vector<128x512xbf16>
    %c0_4 = arith.constant 0 : index
    %c0_5 = arith.constant 0 : index
    %5 = vector.load %arg7[%c0_4, %c0_5] : memref<1x512xf32, #tpu.memory_space<vmem>>, vector<1x512xf32>
    %6 = vector.shape_cast %5 : vector<1x512xf32> to vector<1x512xf32>
    %7 = vector.broadcast %6 : vector<1x512xf32> to vector<16x512xf32>
    %c0_6 = arith.constant 0 : index
    %c0_7 = arith.constant 0 : index
    %8 = vector.load %arg11[%c0_6, %c0_7] : memref<16x128xf32, #tpu.memory_space<vmem>>, vector<16x128xf32>
    %c0_8 = arith.constant 0 : index
    %c0_9 = arith.constant 0 : index
    %9 = vector.load %arg12[%c0_8, %c0_9] : memref<16x128xf32, #tpu.memory_space<vmem>>, vector<16x128xf32>
    %c0_i32_10 = arith.constant 0 : i32
    %10 = arith.index_cast %c0_i32_10 : i32 to index
    %c0_11 = arith.constant 0 : index
    %c0_12 = arith.constant 0 : index
    %11 = vector.load %arg2[%10, %c0_11, %c0_12] : memref<8x16x128xbf16, #tpu.memory_space<vmem>>, vector<1x16x128xbf16>
    %12 = vector.shape_cast %11 : vector<1x16x128xbf16> to vector<16x128xbf16>
    %cst = arith.constant dense<0.000000e+00> : vector<16x512xf32>
    %13 = tpu.matmul %12, %3, %cst {dimension_numbers = #tpu.dot_dimension_numbers<[1], [0], [0], [1], [0, 0, 1, 1], [], []>} : vector<16x128xbf16>, vector<128x512xbf16>, vector<16x512xf32> -> vector<16x512xf32>
    %14 = arith.truncf %8 : vector<16x128xf32> to vector<16x128xbf16>
    %cst_13 = arith.constant dense<0.000000e+00> : vector<16x512xf32>
    %15 = tpu.matmul %14, %4, %cst_13 {dimension_numbers = #tpu.dot_dimension_numbers<[1], [0], [0], [1], [0, 0, 1, 1], [], []>} : vector<16x128xbf16>, vector<128x512xbf16>, vector<16x512xf32> -> vector<16x512xf32>
    %16 = arith.addf %13, %15 : vector<16x512xf32>
    %17 = arith.addf %16, %7 : vector<16x512xf32>
    %cst_14 = arith.constant 0.000000e+00 : f32
    %18 = vector.broadcast %cst_14 : f32 to vector<16x512xf32>
    %19 = arith.cmpf oge, %17, %18 : vector<16x512xf32>
    %20 = arith.extui %19 : vector<16x512xi1> to vector<16x512xi32>
    %21 = arith.sitofp %20 : vector<16x512xi32> to vector<16x512xf32>
    %22 = vector.extract_strided_slice %21 {offsets = [0, 0], sizes = [16, 128], strides = [1, 1]} : vector<16x512xf32> to vector<16x128xf32>
    %23 = vector.extract_strided_slice %21 {offsets = [0, 128], sizes = [16, 128], strides = [1, 1]} : vector<16x512xf32> to vector<16x128xf32>
    %24 = vector.extract_strided_slice %21 {offsets = [0, 256], sizes = [16, 128], strides = [1, 1]} : vector<16x512xf32> to vector<16x128xf32>
    %25 = vector.extract_strided_slice %21 {offsets = [0, 384], sizes = [16, 128], strides = [1, 1]} : vector<16x512xf32> to vector<16x128xf32>
    %26 = arith.mulf %9, %23 : vector<16x128xf32>
    %27 = arith.mulf %22, %24 : vector<16x128xf32>
    %28 = arith.addf %26, %27 : vector<16x128xf32>
    %29 = arith.mulf %28, %25 : vector<16x128xf32>
    %30 = arith.truncf %29 : vector<16x128xf32> to vector<16x128xbf16>
    %31 = arith.index_cast %c0_i32_10 : i32 to index
    %c0_15 = arith.constant 0 : index
    %c0_16 = arith.constant 0 : index
    %32 = vector.load %arg8[%31, %c0_15, %c0_16] : memref<8x16x128xbf16, #tpu.memory_space<vmem>>, vector<1x16x128xbf16>
    %33 = vector.shape_cast %32 : vector<1x16x128xbf16> to vector<16x128xbf16>
    %34 = vector.shape_cast %30 : vector<16x128xbf16> to vector<1x16x128xbf16>
    tpu.vector_store %arg8[%31, %c0_15, %c0_16], %34 {strides = array<i32>} : memref<8x16x128xbf16, #tpu.memory_space<vmem>>, vector<1x16x128xbf16>,
    %c1_i32 = arith.constant 1 : i32
    %35 = arith.index_cast %c1_i32 : i32 to index
    %c0_17 = arith.constant 0 : index
    %c0_18 = arith.constant 0 : index
    %36 = vector.load %arg2[%35, %c0_17, %c0_18] : memref<8x16x128xbf16, #tpu.memory_space<vmem>>, vector<1x16x128xbf16>
    %37 = vector.shape_cast %36 : vector<1x16x128xbf16> to vector<16x128xbf16>
    %cst_19 = arith.constant dense<0.000000e+00> : vector<16x512xf32>
    %38 = tpu.matmul %37, %3, %cst_19 {dimension_numbers = #tpu.dot_dimension_numbers<[1], [0], [0], [1], [0, 0, 1, 1], [], []>} : vector<16x128xbf16>, vector<128x512xbf16>, vector<16x512xf32> -> vector<16x512xf32>
    %39 = arith.truncf %29 : vector<16x128xf32> to vector<16x128xbf16>
    %cst_20 = arith.constant dense<0.000000e+00> : vector<16x512xf32>
    %40 = tpu.matmul %39, %4, %cst_20 {dimension_numbers = #tpu.dot_dimension_numbers<[1], [0], [0], [1], [0, 0, 1, 1], [], []>} : vector<16x128xbf16>, vector<128x512xbf16>, vector<16x512xf32> -> vector<16x512xf32>
    %41 = arith.addf %38, %40 : vector<16x512xf32>
    %42 = arith.addf %41, %7 : vector<16x512xf32>
    %cst_21 = arith.constant 0.000000e+00 : f32
    %43 = vector.broadcast %cst_21 : f32 to vector<16x512xf32>
    %44 = arith.cmpf oge, %42, %43 : vector<16x512xf32>
    %45 = arith.extui %44 : vector<16x512xi1> to vector<16x512xi32>
    %46 = arith.sitofp %45 : vector<16x512xi32> to vector<16x512xf32>
    %47 = vector.extract_strided_slice %46 {offsets = [0, 0], sizes = [16, 128], strides = [1, 1]} : vector<16x512xf32> to vector<16x128xf32>
    %48 = vector.extract_strided_slice %46 {offsets = [0, 128], sizes = [16, 128], strides = [1, 1]} : vector<16x512xf32> to vector<16x128xf32>
    %49 = vector.extract_strided_slice %46 {offsets = [0, 256], sizes = [16, 128], strides = [1, 1]} : vector<16x512xf32> to vector<16x128xf32>
    %50 = vector.extract_strided_slice %46 {offsets = [0, 384], sizes = [16, 128], strides = [1, 1]} : vector<16x512xf32> to vector<16x128xf32>
    %51 = arith.mulf %28, %48 : vector<16x128xf32>
    %52 = arith.mulf %47, %49 : vector<16x128xf32>
    %53 = arith.addf %51, %52 : vector<16x128xf32>
    %54 = arith.mulf %53, %50 : vector<16x128xf32>
    %55 = arith.truncf %54 : vector<16x128xf32> to vector<16x128xbf16>
    %56 = arith.index_cast %c1_i32 : i32 to index
    %c0_22 = arith.constant 0 : index
    %c0_23 = arith.constant 0 : index
    %57 = vector.load %arg8[%56, %c0_22, %c0_23] : memref<8x16x128xbf16, #tpu.memory_space<vmem>>, vector<1x16x128xbf16>
    %58 = vector.shape_cast %57 : vector<1x16x128xbf16> to vector<16x128xbf16>
    %59 = vector.shape_cast %55 : vector<16x128xbf16> to vector<1x16x128xbf16>
    tpu.vector_store %arg8[%56, %c0_22, %c0_23], %59 {strides = array<i32>} : memref<8x16x128xbf16, #tpu.memory_space<vmem>>, vector<1x16x128xbf16>,
    %c2_i32 = arith.constant 2 : i32
    %60 = arith.index_cast %c2_i32 : i32 to index
    %c0_24 = arith.constant 0 : index
    %c0_25 = arith.constant 0 : index
    %61 = vector.load %arg2[%60, %c0_24, %c0_25] : memref<8x16x128xbf16, #tpu.memory_space<vmem>>, vector<1x16x128xbf16>
    %62 = vector.shape_cast %61 : vector<1x16x128xbf16> to vector<16x128xbf16>
    %cst_26 = arith.constant dense<0.000000e+00> : vector<16x512xf32>
    %63 = tpu.matmul %62, %3, %cst_26 {dimension_numbers = #tpu.dot_dimension_numbers<[1], [0], [0], [1], [0, 0, 1, 1], [], []>} : vector<16x128xbf16>, vector<128x512xbf16>, vector<16x512xf32> -> vector<16x512xf32>
    %64 = arith.truncf %54 : vector<16x128xf32> to vector<16x128xbf16>
    %cst_27 = arith.constant dense<0.000000e+00> : vector<16x512xf32>
    %65 = tpu.matmul %64, %4, %cst_27 {dimension_numbers = #tpu.dot_dimension_numbers<[1], [0], [0], [1], [0, 0, 1, 1], [], []>} : vector<16x128xbf16>, vector<128x512xbf16>, vector<16x512xf32> -> vector<16x512xf32>
    %66 = arith.addf %63, %65 : vector<16x512xf32>
    %67 = arith.addf %66, %7 : vector<16x512xf32>
    %cst_28 = arith.constant 0.000000e+00 : f32
    %68 = vector.broadcast %cst_28 : f32 to vector<16x512xf32>
    %69 = arith.cmpf oge, %67, %68 : vector<16x512xf32>
    %70 = arith.extui %69 : vector<16x512xi1> to vector<16x512xi32>
    %71 = arith.sitofp %70 : vector<16x512xi32> to vector<16x512xf32>
    %72 = vector.extract_strided_slice %71 {offsets = [0, 0], sizes = [16, 128], strides = [1, 1]} : vector<16x512xf32> to vector<16x128xf32>
    %73 = vector.extract_strided_slice %71 {offsets = [0, 128], sizes = [16, 128], strides = [1, 1]} : vector<16x512xf32> to vector<16x128xf32>
    %74 = vector.extract_strided_slice %71 {offsets = [0, 256], sizes = [16, 128], strides = [1, 1]} : vector<16x512xf32> to vector<16x128xf32>
    %75 = vector.extract_strided_slice %71 {offsets = [0, 384], sizes = [16, 128], strides = [1, 1]} : vector<16x512xf32> to vector<16x128xf32>
    %76 = arith.mulf %53, %73 : vector<16x128xf32>
    %77 = arith.mulf %72, %74 : vector<16x128xf32>
    %78 = arith.addf %76, %77 : vector<16x128xf32>
    %79 = arith.mulf %78, %75 : vector<16x128xf32>
    %80 = arith.truncf %79 : vector<16x128xf32> to vector<16x128xbf16>
    %81 = arith.index_cast %c2_i32 : i32 to index
    %c0_29 = arith.constant 0 : index
    %c0_30 = arith.constant 0 : index
    %82 = vector.load %arg8[%81, %c0_29, %c0_30] : memref<8x16x128xbf16, #tpu.memory_space<vmem>>, vector<1x16x128xbf16>
    %83 = vector.shape_cast %82 : vector<1x16x128xbf16> to vector<16x128xbf16>
    %84 = vector.shape_cast %80 : vector<16x128xbf16> to vector<1x16x128xbf16>
    tpu.vector_store %arg8[%81, %c0_29, %c0_30], %84 {strides = array<i32>} : memref<8x16x128xbf16, #tpu.memory_space<vmem>>, vector<1x16x128xbf16>,
    %c3_i32 = arith.constant 3 : i32
    %85 = arith.index_cast %c3_i32 : i32 to index
    %c0_31 = arith.constant 0 : index
    %c0_32 = arith.constant 0 : index
    %86 = vector.load %arg2[%85, %c0_31, %c0_32] : memref<8x16x128xbf16, #tpu.memory_space<vmem>>, vector<1x16x128xbf16>
    %87 = vector.shape_cast %86 : vector<1x16x128xbf16> to vector<16x128xbf16>
    %cst_33 = arith.constant dense<0.000000e+00> : vector<16x512xf32>
    %88 = tpu.matmul %87, %3, %cst_33 {dimension_numbers = #tpu.dot_dimension_numbers<[1], [0], [0], [1], [0, 0, 1, 1], [], []>} : vector<16x128xbf16>, vector<128x512xbf16>, vector<16x512xf32> -> vector<16x512xf32>
    %89 = arith.truncf %79 : vector<16x128xf32> to vector<16x128xbf16>
    %cst_34 = arith.constant dense<0.000000e+00> : vector<16x512xf32>
    %90 = tpu.matmul %89, %4, %cst_34 {dimension_numbers = #tpu.dot_dimension_numbers<[1], [0], [0], [1], [0, 0, 1, 1], [], []>} : vector<16x128xbf16>, vector<128x512xbf16>, vector<16x512xf32> -> vector<16x512xf32>
    %91 = arith.addf %88, %90 : vector<16x512xf32>
    %92 = arith.addf %91, %7 : vector<16x512xf32>
    %cst_35 = arith.constant 0.000000e+00 : f32
    %93 = vector.broadcast %cst_35 : f32 to vector<16x512xf32>
    %94 = arith.cmpf oge, %92, %93 : vector<16x512xf32>
    %95 = arith.extui %94 : vector<16x512xi1> to vector<16x512xi32>
    %96 = arith.sitofp %95 : vector<16x512xi32> to vector<16x512xf32>
    %97 = vector.extract_strided_slice %96 {offsets = [0, 0], sizes = [16, 128], strides = [1, 1]} : vector<16x512xf32> to vector<16x128xf32>
    %98 = vector.extract_strided_slice %96 {offsets = [0, 128], sizes = [16, 128], strides = [1, 1]} : vector<16x512xf32> to vector<16x128xf32>
    %99 = vector.extract_strided_slice %96 {offsets = [0, 256], sizes = [16, 128], strides = [1, 1]} : vector<16x512xf32> to vector<16x128xf32>
    %100 = vector.extract_strided_slice %96 {offsets = [0, 384], sizes = [16, 128], strides = [1, 1]} : vector<16x512xf32> to vector<16x128xf32>
    %101 = arith.mulf %78, %98 : vector<16x128xf32>
    %102 = arith.mulf %97, %99 : vector<16x128xf32>
    %103 = arith.addf %101, %102 : vector<16x128xf32>
    %104 = arith.mulf %103, %100 : vector<16x128xf32>
    %105 = arith.truncf %104 : vector<16x128xf32> to vector<16x128xbf16>
    %106 = arith.index_cast %c3_i32 : i32 to index
    %c0_36 = arith.constant 0 : index
    %c0_37 = arith.constant 0 : index
    %107 = vector.load %arg8[%106, %c0_36, %c0_37] : memref<8x16x128xbf16, #tpu.memory_space<vmem>>, vector<1x16x128xbf16>
    %108 = vector.shape_cast %107 : vector<1x16x128xbf16> to vector<16x128xbf16>
    %109 = vector.shape_cast %105 : vector<16x128xbf16> to vector<1x16x128xbf16>
    tpu.vector_store %arg8[%106, %c0_36, %c0_37], %109 {strides = array<i32>} : memref<8x16x128xbf16, #tpu.memory_space<vmem>>, vector<1x16x128xbf16>,
    %c4_i32 = arith.constant 4 : i32
    %110 = arith.index_cast %c4_i32 : i32 to index
    %c0_38 = arith.constant 0 : index
    %c0_39 = arith.constant 0 : index
    %111 = vector.load %arg2[%110, %c0_38, %c0_39] : memref<8x16x128xbf16, #tpu.memory_space<vmem>>, vector<1x16x128xbf16>
    %112 = vector.shape_cast %111 : vector<1x16x128xbf16> to vector<16x128xbf16>
    %cst_40 = arith.constant dense<0.000000e+00> : vector<16x512xf32>
    %113 = tpu.matmul %112, %3, %cst_40 {dimension_numbers = #tpu.dot_dimension_numbers<[1], [0], [0], [1], [0, 0, 1, 1], [], []>} : vector<16x128xbf16>, vector<128x512xbf16>, vector<16x512xf32> -> vector<16x512xf32>
    %114 = arith.truncf %104 : vector<16x128xf32> to vector<16x128xbf16>
    %cst_41 = arith.constant dense<0.000000e+00> : vector<16x512xf32>
    %115 = tpu.matmul %114, %4, %cst_41 {dimension_numbers = #tpu.dot_dimension_numbers<[1], [0], [0], [1], [0, 0, 1, 1], [], []>} : vector<16x128xbf16>, vector<128x512xbf16>, vector<16x512xf32> -> vector<16x512xf32>
    %116 = arith.addf %113, %115 : vector<16x512xf32>
    %117 = arith.addf %116, %7 : vector<16x512xf32>
    %cst_42 = arith.constant 0.000000e+00 : f32
    %118 = vector.broadcast %cst_42 : f32 to vector<16x512xf32>
    %119 = arith.cmpf oge, %117, %118 : vector<16x512xf32>
    %120 = arith.extui %119 : vector<16x512xi1> to vector<16x512xi32>
    %121 = arith.sitofp %120 : vector<16x512xi32> to vector<16x512xf32>
    %122 = vector.extract_strided_slice %121 {offsets = [0, 0], sizes = [16, 128], strides = [1, 1]} : vector<16x512xf32> to vector<16x128xf32>
    %123 = vector.extract_strided_slice %121 {offsets = [0, 128], sizes = [16, 128], strides = [1, 1]} : vector<16x512xf32> to vector<16x128xf32>
    %124 = vector.extract_strided_slice %121 {offsets = [0, 256], sizes = [16, 128], strides = [1, 1]} : vector<16x512xf32> to vector<16x128xf32>
    %125 = vector.extract_strided_slice %121 {offsets = [0, 384], sizes = [16, 128], strides = [1, 1]} : vector<16x512xf32> to vector<16x128xf32>
    %126 = arith.mulf %103, %123 : vector<16x128xf32>
    %127 = arith.mulf %122, %124 : vector<16x128xf32>
    %128 = arith.addf %126, %127 : vector<16x128xf32>
    %129 = arith.mulf %128, %125 : vector<16x128xf32>
    %130 = arith.truncf %129 : vector<16x128xf32> to vector<16x128xbf16>
    %131 = arith.index_cast %c4_i32 : i32 to index
    %c0_43 = arith.constant 0 : index
    %c0_44 = arith.constant 0 : index
    %132 = vector.load %arg8[%131, %c0_43, %c0_44] : memref<8x16x128xbf16, #tpu.memory_space<vmem>>, vector<1x16x128xbf16>
    %133 = vector.shape_cast %132 : vector<1x16x128xbf16> to vector<16x128xbf16>
    %134 = vector.shape_cast %130 : vector<16x128xbf16> to vector<1x16x128xbf16>
    tpu.vector_store %arg8[%131, %c0_43, %c0_44], %134 {strides = array<i32>} : memref<8x16x128xbf16, #tpu.memory_space<vmem>>, vector<1x16x128xbf16>,
    %c5_i32 = arith.constant 5 : i32
    %135 = arith.index_cast %c5_i32 : i32 to index
    %c0_45 = arith.constant 0 : index
    %c0_46 = arith.constant 0 : index
    %136 = vector.load %arg2[%135, %c0_45, %c0_46] : memref<8x16x128xbf16, #tpu.memory_space<vmem>>, vector<1x16x128xbf16>
    %137 = vector.shape_cast %136 : vector<1x16x128xbf16> to vector<16x128xbf16>
    %cst_47 = arith.constant dense<0.000000e+00> : vector<16x512xf32>
    %138 = tpu.matmul %137, %3, %cst_47 {dimension_numbers = #tpu.dot_dimension_numbers<[1], [0], [0], [1], [0, 0, 1, 1], [], []>} : vector<16x128xbf16>, vector<128x512xbf16>, vector<16x512xf32> -> vector<16x512xf32>
    %139 = arith.truncf %129 : vector<16x128xf32> to vector<16x128xbf16>
    %cst_48 = arith.constant dense<0.000000e+00> : vector<16x512xf32>
    %140 = tpu.matmul %139, %4, %cst_48 {dimension_numbers = #tpu.dot_dimension_numbers<[1], [0], [0], [1], [0, 0, 1, 1], [], []>} : vector<16x128xbf16>, vector<128x512xbf16>, vector<16x512xf32> -> vector<16x512xf32>
    %141 = arith.addf %138, %140 : vector<16x512xf32>
    %142 = arith.addf %141, %7 : vector<16x512xf32>
    %cst_49 = arith.constant 0.000000e+00 : f32
    %143 = vector.broadcast %cst_49 : f32 to vector<16x512xf32>
    %144 = arith.cmpf oge, %142, %143 : vector<16x512xf32>
    %145 = arith.extui %144 : vector<16x512xi1> to vector<16x512xi32>
    %146 = arith.sitofp %145 : vector<16x512xi32> to vector<16x512xf32>
    %147 = vector.extract_strided_slice %146 {offsets = [0, 0], sizes = [16, 128], strides = [1, 1]} : vector<16x512xf32> to vector<16x128xf32>
    %148 = vector.extract_strided_slice %146 {offsets = [0, 128], sizes = [16, 128], strides = [1, 1]} : vector<16x512xf32> to vector<16x128xf32>
    %149 = vector.extract_strided_slice %146 {offsets = [0, 256], sizes = [16, 128], strides = [1, 1]} : vector<16x512xf32> to vector<16x128xf32>
    %150 = vector.extract_strided_slice %146 {offsets = [0, 384], sizes = [16, 128], strides = [1, 1]} : vector<16x512xf32> to vector<16x128xf32>
    %151 = arith.mulf %128, %148 : vector<16x128xf32>
    %152 = arith.mulf %147, %149 : vector<16x128xf32>
    %153 = arith.addf %151, %152 : vector<16x128xf32>
    %154 = arith.mulf %153, %150 : vector<16x128xf32>
    %155 = arith.truncf %154 : vector<16x128xf32> to vector<16x128xbf16>
    %156 = arith.index_cast %c5_i32 : i32 to index
    %c0_50 = arith.constant 0 : index
    %c0_51 = arith.constant 0 : index
    %157 = vector.load %arg8[%156, %c0_50, %c0_51] : memref<8x16x128xbf16, #tpu.memory_space<vmem>>, vector<1x16x128xbf16>
    %158 = vector.shape_cast %157 : vector<1x16x128xbf16> to vector<16x128xbf16>
    %159 = vector.shape_cast %155 : vector<16x128xbf16> to vector<1x16x128xbf16>
    tpu.vector_store %arg8[%156, %c0_50, %c0_51], %159 {strides = array<i32>} : memref<8x16x128xbf16, #tpu.memory_space<vmem>>, vector<1x16x128xbf16>,
    %c6_i32 = arith.constant 6 : i32
    %160 = arith.index_cast %c6_i32 : i32 to index
    %c0_52 = arith.constant 0 : index
    %c0_53 = arith.constant 0 : index
    %161 = vector.load %arg2[%160, %c0_52, %c0_53] : memref<8x16x128xbf16, #tpu.memory_space<vmem>>, vector<1x16x128xbf16>
    %162 = vector.shape_cast %161 : vector<1x16x128xbf16> to vector<16x128xbf16>
    %cst_54 = arith.constant dense<0.000000e+00> : vector<16x512xf32>
    %163 = tpu.matmul %162, %3, %cst_54 {dimension_numbers = #tpu.dot_dimension_numbers<[1], [0], [0], [1], [0, 0, 1, 1], [], []>} : vector<16x128xbf16>, vector<128x512xbf16>, vector<16x512xf32> -> vector<16x512xf32>
    %164 = arith.truncf %154 : vector<16x128xf32> to vector<16x128xbf16>
    %cst_55 = arith.constant dense<0.000000e+00> : vector<16x512xf32>
    %165 = tpu.matmul %164, %4, %cst_55 {dimension_numbers = #tpu.dot_dimension_numbers<[1], [0], [0], [1], [0, 0, 1, 1], [], []>} : vector<16x128xbf16>, vector<128x512xbf16>, vector<16x512xf32> -> vector<16x512xf32>
    %166 = arith.addf %163, %165 : vector<16x512xf32>
    %167 = arith.addf %166, %7 : vector<16x512xf32>
    %cst_56 = arith.constant 0.000000e+00 : f32
    %168 = vector.broadcast %cst_56 : f32 to vector<16x512xf32>
    %169 = arith.cmpf oge, %167, %168 : vector<16x512xf32>
    %170 = arith.extui %169 : vector<16x512xi1> to vector<16x512xi32>
    %171 = arith.sitofp %170 : vector<16x512xi32> to vector<16x512xf32>
    %172 = vector.extract_strided_slice %171 {offsets = [0, 0], sizes = [16, 128], strides = [1, 1]} : vector<16x512xf32> to vector<16x128xf32>
    %173 = vector.extract_strided_slice %171 {offsets = [0, 128], sizes = [16, 128], strides = [1, 1]} : vector<16x512xf32> to vector<16x128xf32>
    %174 = vector.extract_strided_slice %171 {offsets = [0, 256], sizes = [16, 128], strides = [1, 1]} : vector<16x512xf32> to vector<16x128xf32>
    %175 = vector.extract_strided_slice %171 {offsets = [0, 384], sizes = [16, 128], strides = [1, 1]} : vector<16x512xf32> to vector<16x128xf32>
    %176 = arith.mulf %153, %173 : vector<16x128xf32>
    %177 = arith.mulf %172, %174 : vector<16x128xf32>
    %178 = arith.addf %176, %177 : vector<16x128xf32>
    %179 = arith.mulf %178, %175 : vector<16x128xf32>
    %180 = arith.truncf %179 : vector<16x128xf32> to vector<16x128xbf16>
    %181 = arith.index_cast %c6_i32 : i32 to index
    %c0_57 = arith.constant 0 : index
    %c0_58 = arith.constant 0 : index
    %182 = vector.load %arg8[%181, %c0_57, %c0_58] : memref<8x16x128xbf16, #tpu.memory_space<vmem>>, vector<1x16x128xbf16>
    %183 = vector.shape_cast %182 : vector<1x16x128xbf16> to vector<16x128xbf16>
    %184 = vector.shape_cast %180 : vector<16x128xbf16> to vector<1x16x128xbf16>
    tpu.vector_store %arg8[%181, %c0_57, %c0_58], %184 {strides = array<i32>} : memref<8x16x128xbf16, #tpu.memory_space<vmem>>, vector<1x16x128xbf16>,
    %c7_i32 = arith.constant 7 : i32
    %185 = arith.index_cast %c7_i32 : i32 to index
    %c0_59 = arith.constant 0 : index
    %c0_60 = arith.constant 0 : index
    %186 = vector.load %arg2[%185, %c0_59, %c0_60] : memref<8x16x128xbf16, #tpu.memory_space<vmem>>, vector<1x16x128xbf16>
    %187 = vector.shape_cast %186 : vector<1x16x128xbf16> to vector<16x128xbf16>
    %cst_61 = arith.constant dense<0.000000e+00> : vector<16x512xf32>
    %188 = tpu.matmul %187, %3, %cst_61 {dimension_numbers = #tpu.dot_dimension_numbers<[1], [0], [0], [1], [0, 0, 1, 1], [], []>} : vector<16x128xbf16>, vector<128x512xbf16>, vector<16x512xf32> -> vector<16x512xf32>
    %189 = arith.truncf %179 : vector<16x128xf32> to vector<16x128xbf16>
    %cst_62 = arith.constant dense<0.000000e+00> : vector<16x512xf32>
    %190 = tpu.matmul %189, %4, %cst_62 {dimension_numbers = #tpu.dot_dimension_numbers<[1], [0], [0], [1], [0, 0, 1, 1], [], []>} : vector<16x128xbf16>, vector<128x512xbf16>, vector<16x512xf32> -> vector<16x512xf32>
    %191 = arith.addf %188, %190 : vector<16x512xf32>
    %192 = arith.addf %191, %7 : vector<16x512xf32>
    %cst_63 = arith.constant 0.000000e+00 : f32
    %193 = vector.broadcast %cst_63 : f32 to vector<16x512xf32>
    %194 = arith.cmpf oge, %192, %193 : vector<16x512xf32>
    %195 = arith.extui %194 : vector<16x512xi1> to vector<16x512xi32>
    %196 = arith.sitofp %195 : vector<16x512xi32> to vector<16x512xf32>
    %197 = vector.extract_strided_slice %196 {offsets = [0, 0], sizes = [16, 128], strides = [1, 1]} : vector<16x512xf32> to vector<16x128xf32>
    %198 = vector.extract_strided_slice %196 {offsets = [0, 128], sizes = [16, 128], strides = [1, 1]} : vector<16x512xf32> to vector<16x128xf32>
    %199 = vector.extract_strided_slice %196 {offsets = [0, 256], sizes = [16, 128], strides = [1, 1]} : vector<16x512xf32> to vector<16x128xf32>
    %200 = vector.extract_strided_slice %196 {offsets = [0, 384], sizes = [16, 128], strides = [1, 1]} : vector<16x512xf32> to vector<16x128xf32>
    %201 = arith.mulf %178, %198 : vector<16x128xf32>
    %202 = arith.mulf %197, %199 : vector<16x128xf32>
    %203 = arith.addf %201, %202 : vector<16x128xf32>
    %204 = arith.mulf %203, %200 : vector<16x128xf32>
    %205 = arith.truncf %204 : vector<16x128xf32> to vector<16x128xbf16>
    %206 = arith.index_cast %c7_i32 : i32 to index
    %c0_64 = arith.constant 0 : index
    %c0_65 = arith.constant 0 : index
    %207 = vector.load %arg8[%206, %c0_64, %c0_65] : memref<8x16x128xbf16, #tpu.memory_space<vmem>>, vector<1x16x128xbf16>
    %208 = vector.shape_cast %207 : vector<1x16x128xbf16> to vector<16x128xbf16>
    %209 = vector.shape_cast %205 : vector<16x128xbf16> to vector<1x16x128xbf16>
    tpu.vector_store %arg8[%206, %c0_64, %c0_65], %209 {strides = array<i32>} : memref<8x16x128xbf16, #tpu.memory_space<vmem>>, vector<1x16x128xbf16>,
    %c8_i32 = arith.constant 8 : i32
    %c0_66 = arith.constant 0 : index
    %c0_67 = arith.constant 0 : index
    %210 = vector.load %arg11[%c0_66, %c0_67] : memref<16x128xf32, #tpu.memory_space<vmem>>, vector<16x128xf32>
    tpu.vector_store %arg11[%c0_66, %c0_67], %204 {strides = array<i32>} : memref<16x128xf32, #tpu.memory_space<vmem>>, vector<16x128xf32>,
    %c0_68 = arith.constant 0 : index
    %c0_69 = arith.constant 0 : index
    %211 = vector.load %arg12[%c0_68, %c0_69] : memref<16x128xf32, #tpu.memory_space<vmem>>, vector<16x128xf32>
    tpu.vector_store %arg12[%c0_68, %c0_69], %203 {strides = array<i32>} : memref<16x128xf32, #tpu.memory_space<vmem>>, vector<16x128xf32>,
    %c0_i32_70 = arith.constant 0 : i32
    %212 = arith.cmpi eq, %arg1, %c0_i32_70 : i32
    %213 = arith.extui %212 : i1 to i32
    %c0_i32_71 = arith.constant 0 : i32
    %214 = arith.cmpi ne, %213, %c0_i32_71 : i32
    scf.if %214 {
      %c0_72 = arith.constant 0 : index
      %c0_73 = arith.constant 0 : index
      %215 = vector.load %arg9[%c0_72, %c0_73] : memref<16x128xf32, #tpu.memory_space<vmem>>, vector<16x128xf32>
      tpu.vector_store %arg9[%c0_72, %c0_73], %204 {strides = array<i32>} : memref<16x128xf32, #tpu.memory_space<vmem>>, vector<16x128xf32>,
      %c0_74 = arith.constant 0 : index
      %c0_75 = arith.constant 0 : index
      %216 = vector.load %arg10[%c0_74, %c0_75] : memref<16x128xf32, #tpu.memory_space<vmem>>, vector<16x128xf32>
      tpu.vector_store %arg10[%c0_74, %c0_75], %203 {strides = array<i32>} : memref<16x128xf32, #tpu.memory_space<vmem>>, vector<16x128xf32>,
    } else {
    }
    return
  }
  func.func @transform_0(%arg0: i32, %arg1: i32) -> (i32, i32, i32) {
    %c0_i32 = arith.constant 0 : i32
    %c0_i32_0 = arith.constant 0 : i32
    return %arg1, %arg0, %c0_i32 : i32, i32, i32
  }
  func.func @transform_1(%arg0: i32, %arg1: i32) -> (i32, i32) {
    %c0_i32 = arith.constant 0 : i32
    %c0_i32_0 = arith.constant 0 : i32
    return %arg0, %c0_i32 : i32, i32
  }
  func.func @transform_2(%arg0: i32, %arg1: i32) -> (i32, i32) {
    %c0_i32 = arith.constant 0 : i32
    %c0_i32_0 = arith.constant 0 : i32
    return %arg0, %c0_i32 : i32, i32
  }
  func.func @transform_3(%arg0: i32, %arg1: i32) -> (i32, i32) {
    %c0_i32 = arith.constant 0 : i32
    %c0_i32_0 = arith.constant 0 : i32
    %c0_i32_1 = arith.constant 0 : i32
    return %c0_i32, %c0_i32_0 : i32, i32
  }
  func.func @transform_4(%arg0: i32, %arg1: i32) -> (i32, i32) {
    %c0_i32 = arith.constant 0 : i32
    %c0_i32_0 = arith.constant 0 : i32
    %c0_i32_1 = arith.constant 0 : i32
    return %c0_i32, %c0_i32_0 : i32, i32
  }
  func.func @transform_5(%arg0: i32, %arg1: i32) -> (i32, i32) {
    %c0_i32 = arith.constant 0 : i32
    %c0_i32_0 = arith.constant 0 : i32
    %c0_i32_1 = arith.constant 0 : i32
    return %c0_i32, %c0_i32_0 : i32, i32
  }
  func.func @transform_6(%arg0: i32, %arg1: i32) -> (i32, i32, i32) {
    %c0_i32 = arith.constant 0 : i32
    %c0_i32_0 = arith.constant 0 : i32
    return %arg1, %arg0, %c0_i32 : i32, i32, i32
  }
  func.func @transform_7(%arg0: i32, %arg1: i32) -> (i32, i32) {
    %c0_i32 = arith.constant 0 : i32
    %c0_i32_0 = arith.constant 0 : i32
    return %arg0, %c0_i32 : i32, i32
  }
  func.func @transform_8(%arg0: i32, %arg1: i32) -> (i32, i32) {
    %c0_i32 = arith.constant 0 : i32
    %c0_i32_0 = arith.constant 0 : i32
    return %arg0, %c0_i32 : i32, i32
  }
}

</mosaic_0001>

<bundles_post_ra>
// kernel: tpu_custom_call.1
= control target key start
LH: loop header
LB: loop body
LE: loop exit
PB: predicated region body
PF: predicated region fallthrough
CT: control target
= control target key end

     0   :  { %14 = vsyncpa [#allocation5], 0  ;;  %s4267_s0 = inlined_call_operand.hbm [shape: bf16[8,16,128], index: 0, kind: input, shape index: {}]   ;;  %s4268_s1 = inlined_call_operand.hbm [shape: f32[16,128], index: 1, kind: input, shape index: {}]   ;;  %s4269_s2 = inlined_call_operand.hbm [shape: f32[16,128], index: 2, kind: input, shape index: {}]   ;;  %s4270_s3 = inlined_call_operand.hbm [shape: bf16[128,512], index: 3, kind: input, shape index: {}]   ;;  %s4271_s4 = inlined_call_operand.hbm [shape: bf16[128,512], index: 4, kind: input, shape index: {}]   ;;  %s4272_s5 = inlined_call_operand.vmem [shape: f32[1,512], index: 5, kind: input, shape index: {}]   ;;  %s4273_s6 = inlined_call_operand.hbm [shape: bf16[8,16,128], index: 6, kind: output, shape index: {0}]   ;;  %s4274_s7 = inlined_call_operand.hbm [shape: f32[16,128], index: 7, kind: output, shape index: {1}]   ;;  %s4275_s8 = inlined_call_operand.hbm [shape: f32[16,128], index: 8, kind: output, shape index: {2}]  }
   0x1   :  { %15 = vsyncpa [#allocation8], 0 }
   0x2   :  { %16 = vsyncpa [#allocation11], 0 }
   0x3   :  { %17 = vsyncpa [#allocation6], 0 }
   0x4   :  { %18 = vsyncpa [#allocation15], 0  ;;  %s3077_s27 = smov [#allocation7]   ;;  %s2891_s9 = scalar_lea.hbm %s4268_s1, 256 }
   0x5   :  { %s36_s28 = sshll.u32 %s3077_s27, 4  ;;  %p2892_p0 = scmp.ne.s32.totalorder %s4268_s1, %s2891_s9  ;;  %s37_s28 = int_to_ptr.vmem [resolvable:$true] %s36_s28 }
   0x6   :  { %p2895_p1 = scmp.lt.u32.totalorder %s2891_s9, %s4268_s1 }
   0x8   :  { %p2897_p2 = pnand %p2895_p1, %p2892_p0 }
   0xa   :  { %2900 = shalt.err (!%p2897_p2)
}
   0xb   :  { %s2901_s14 = scalar_lea.vmem %s37_s28, 256  ;;  %p2906_p4 = scmp.lt.s32.totalorder %s37_s28, %s37_s28 }
   0xc   :  { %p2902_p3 = scmp.ne.s32.totalorder %s37_s28, %s2901_s14  ;;  %p2907_p5 = scmp.lt.s32.totalorder %s2901_s14, %s2901_s14 }
   0xe   :  { %p2908_p6 = por %p2907_p5, %p2906_p4 }
  0x10   :  { %p2909_p7 = pnand %p2908_p6, %p2902_p3 }
  0x12   :  { %2912 = shalt.err (!%p2909_p7)
}
  0x13   :  { %s3078_s15 = smov 128   ;;  %s3079_s16 = smov 8  }
  0x14   :  { %42 = dma.hbm_to_vmem [thread:$0]  %s4268_s1, 256, %s37_s28, [#allocation8], %s3078_s15, %s3078_s15, %s3079_s16  }
  0x15   :  { %s3080_s19 = smov [#allocation10]   ;;  %s2913_s23 = scalar_lea.hbm %s4270_s3, 4096 }
  0x16   :  { %s60_s20 = sshll.u32 %s3080_s19, 4  ;;  %p2914_p8 = scmp.ne.s32.totalorder %s4270_s3, %s2913_s23  ;;  %s61_s20 = int_to_ptr.vmem [resolvable:$true] %s60_s20 }
  0x17   :  { %p2917_p9 = scmp.lt.u32.totalorder %s2913_s23, %s4270_s3 }
  0x19   :  { %p2919_p10 = pnand %p2917_p9, %p2914_p8 }
  0x1b   :  { %2922 = shalt.err (!%p2919_p10)
}
  0x1c   :  { %s2923_s29 = scalar_lea.vmem %s61_s20, 4096  ;;  %p2928_p12 = scmp.lt.s32.totalorder %s61_s20, %s61_s20 }
  0x1d   :  { %p2924_p11 = scmp.ne.s32.totalorder %s61_s20, %s2923_s29  ;;  %p2929_p13 = scmp.lt.s32.totalorder %s2923_s29, %s2923_s29 }
  0x1f   :  { %p2930_p0 = por %p2929_p13, %p2928_p12 }
  0x21   :  { %p2931_p1 = pnand %p2930_p0, %p2924_p11 }
  0x23   :  { %2934 = shalt.err (!%p2931_p1)
}
  0x24   :  { %s3081_s1 = smov 256   ;;  %s3082_s28 = smov 16  }
  0x25   :  { %66 = dma.hbm_to_vmem [thread:$0]  %s4270_s3, 4096, %s61_s20, [#allocation11], %s3081_s1, %s3081_s1, %s3082_s28  }
  0x26   :  { %s3083_s10 = smov [#allocation4]   ;;  %s2935_s14 = scalar_lea.hbm %s4267_s0, 1024 }
  0x27   :  { %s24_s11 = sshll.u32 %s3083_s10, 4  ;;  %p2936_p2 = scmp.ne.s32.totalorder %s4267_s0, %s2935_s14  ;;  %s25_s11 = int_to_ptr.vmem [resolvable:$true] %s24_s11 }
  0x28   :  { %p2939_p3 = scmp.lt.u32.totalorder %s2935_s14, %s4267_s0 }
  0x2a   :  { %p2941_p4 = pnand %p2939_p3, %p2936_p2 }
  0x2c   :  { %2944 = shalt.err (!%p2941_p4)
}
  0x2d   :  { %s2945_s22 = scalar_lea.vmem %s25_s11, 1024  ;;  %p2950_p6 = scmp.lt.s32.totalorder %s25_s11, %s25_s11 }
  0x2e   :  { %p2946_p5 = scmp.ne.s32.totalorder %s25_s11, %s2945_s22  ;;  %p2951_p7 = scmp.lt.s32.totalorder %s2945_s22, %s2945_s22 }
  0x30   :  { %p2952_p8 = por %p2951_p7, %p2950_p6 }
  0x32   :  { %p2953_p9 = pnand %p2952_p8, %p2946_p5 }
  0x34   :  { %2956 = shalt.err (!%p2953_p9)
}
  0x35   :  { %s3084_s3 = smov 64   ;;  %s3085_s20 = smov 4  }
  0x36   :  { %30 = dma.hbm_to_vmem [thread:$0]  %s4267_s0, 1024, %s25_s11, [#allocation5], %s3084_s3, %s3084_s3, %s3085_s20  }
  0x37   :  { %s3086_s25 = smov [#allocation9]   ;;  %s3087_s27 = smov [#allocation12]  }
  0x38   :  { %s48_s26 = sshll.u32 %s3086_s25, 4  ;;  %s72_s29 = sshll.u32 %s3087_s27, 4  ;;  %s49_s26 = int_to_ptr.vmem [resolvable:$true] %s48_s26  ;;  %s73_s29 = int_to_ptr.vmem [resolvable:$true] %s72_s29 }
  0x39   :  { %s2957_s10 = scalar_lea.hbm %s4269_s2, 256 }
  0x3a   :  { %p2958_p10 = scmp.ne.s32.totalorder %s4269_s2, %s2957_s10  ;;  %p2961_p11 = scmp.lt.u32.totalorder %s2957_s10, %s4269_s2 }
  0x3c   :  { %p2963_p12 = pnand %p2961_p11, %p2958_p10 }
  0x3e   :  { %2966 = shalt.err (!%p2963_p12)
}
  0x3f   :  { %s2967_s0 = scalar_lea.vmem %s49_s26, 256  ;;  %p2972_p0 = scmp.lt.s32.totalorder %s49_s26, %s49_s26 }
  0x40   :  { %p2968_p13 = scmp.ne.s32.totalorder %s49_s26, %s2967_s0  ;;  %p2973_p1 = scmp.lt.s32.totalorder %s2967_s0, %s2967_s0 }
  0x42   :  { %p2974_p2 = por %p2973_p1, %p2972_p0 }
  0x44   :  { %p2975_p3 = pnand %p2974_p2, %p2968_p13 }
  0x46   :  { %2978 = shalt.err (!%p2975_p3)
}
  0x47   :  { %54 = dma.hbm_to_vmem [thread:$0]  %s4269_s2, 256, %s49_s26, [#allocation8], %s3078_s15, %s3078_s15, %s3079_s16  }
  0x48   :  { %s2979_s22 = scalar_lea.hbm %s4271_s4, 4096 }
  0x49   :  { %p2980_p4 = scmp.ne.s32.totalorder %s4271_s4, %s2979_s22  ;;  %p2983_p5 = scmp.lt.u32.totalorder %s2979_s22, %s4271_s4 }
  0x4b   :  { %p2985_p6 = pnand %p2983_p5, %p2980_p4 }
  0x4d   :  { %2988 = shalt.err (!%p2985_p6)
}
  0x4e   :  { %s2989_s30 = scalar_lea.vmem %s73_s29, 4096  ;;  %p2994_p8 = scmp.lt.s32.totalorder %s73_s29, %s73_s29 }
  0x4f   :  { %p2990_p7 = scmp.ne.s32.totalorder %s73_s29, %s2989_s30  ;;  %p2995_p9 = scmp.lt.s32.totalorder %s2989_s30, %s2989_s30 }
  0x51   :  { %p2996_p10 = por %p2995_p9, %p2994_p8 }
  0x53   :  { %p2997_p11 = pnand %p2996_p10, %p2990_p7 }
  0x55   :  { %3000 = shalt.err (!%p2997_p11)
}
  0x56   :  { %78 = dma.hbm_to_vmem [thread:$0]  %s4271_s4, 4096, %s73_s29, [#allocation11], %s3081_s1, %s3081_s1, %s3082_s28  }
  0x57   :  { %3067 = dma.done.wait [#allocation5], 1024  }
  0x58   :  { %3068 = vsyncadd [#allocation5], 4294966272 }
  0x59   :  { %3069 = dma.done.wait [#allocation8], 512  }
  0x5a   :  { %3070 = vsyncadd [#allocation8], 4294966784 }
  0x5b   :  { %3071 = dma.done.wait [#allocation11], 8192  }
  0x5c   :  { %3072 = vsyncadd [#allocation11], 4294959104  ;;  %v4276_v0 = vmov 0   ;;  %v3215_v1 = vld [vmem:[#allocation12 + $0x4] ss:$16 sps:$4 sm:$0xff]   ;;  %v102_v34 = vld [vmem:[#allocation7 + $0x8] sm:$0xff] }
  0x5d   :  { %394 = vmatprep.mubr.bf16.mxu0 %v4276_v0  ;;  %437 = vmatprep.mubr.bf16.mxu1 %v4276_v0  ;;  %v3217_v2 = vld [vmem:[#allocation12 + $0xc] ss:$16 sps:$4 sm:$0xff]   ;;  %v3220_v3 = vld [vmem:[#allocation12] ss:$16 sps:$4 sm:$0xff]   ;;  %v3222_v4 = vld [vmem:[#allocation12 + $0x8] ss:$16 sps:$4 sm:$0xff]  }
  0x5e   :  { %362 = vmatprep.subr.bf16.mxu0 %v3215_v1  ;;  %405 = vmatprep.subr.bf16.mxu1 %v3217_v2  ;;  %v3225_v5 = vld [vmem:[#allocation12 + $0x24] ss:$16 sps:$4 sm:$0xff]   ;;  %v3229_v6 = vld [vmem:[#allocation12 + $0x2c] ss:$16 sps:$4 sm:$0xff]   ;;  %v3231_v7 = vld [vmem:[#allocation12 + $0x20] ss:$16 sps:$4 sm:$0xff]  }
  0x5f   :  { %363 = vmatpush1.bf16.msra.mxu0 %v3220_v3  ;;  %406 = vmatpush1.bf16.msra.mxu1 %v3222_v4  ;;  %v3234_v8 = vld [vmem:[#allocation12 + $0x28] ss:$16 sps:$4 sm:$0xff]   ;;  %v3237_v9 = vld [vmem:[#allocation12 + $0x44] ss:$16 sps:$4 sm:$0xff]   ;;  %v3239_v10 = vld [vmem:[#allocation12 + $0x4c] ss:$16 sps:$4 sm:$0xff]  }
  0x60   :  { %364 = vmatprep.subr.bf16.mxu0 %v3225_v5  ;;  %407 = vmatprep.subr.bf16.mxu1 %v3229_v6  ;;  %v3241_v11 = vld [vmem:[#allocation12 + $0x40] ss:$16 sps:$4 sm:$0xff]   ;;  %v3243_v12 = vld [vmem:[#allocation12 + $0x48] ss:$16 sps:$4 sm:$0xff]   ;;  %v3247_v13 = vld [vmem:[#allocation12 + $0x64] ss:$16 sps:$4 sm:$0xff]  }
  0x61   :  { %4374 = vst [vmem:[#allocation22_spill] sm:$0xff] %v3243_v12  ;;  %4375 = vst [vmem:[#allocation23_spill] sm:$0xff] %v3247_v13  ;;  %v3251_v14 = vld [vmem:[#allocation12 + $0x6c] ss:$16 sps:$4 sm:$0xff]   ;;  %v3253_v15 = vld [vmem:[#allocation12 + $0x60] ss:$16 sps:$4 sm:$0xff]  }
  0x62   :  { %4376 = vst [vmem:[#allocation24_spill] sm:$0xff] %v3251_v14  ;;  %4377 = vst [vmem:[#allocation25_spill] sm:$0xff] %v3253_v15  ;;  %v3257_v16 = vld [vmem:[#allocation12 + $0x68] ss:$16 sps:$4 sm:$0xff]   ;;  %v3259_v17 = vld [vmem:[#allocation12 + $0x84] ss:$16 sps:$4 sm:$0xff]  }
  0x63   :  { %365 = vmatpush1.bf16.msra.mxu0 %v3231_v7  ;;  %408 = vmatpush1.bf16.msra.mxu1 %v3234_v8  ;;  %4378 = vst [vmem:[#allocation26_spill] sm:$0xff] %v3257_v16  ;;  %4379 = vst [vmem:[#allocation27_spill] sm:$0xff] %v3259_v17  ;;  %v3263_v18 = vld [vmem:[#allocation12 + $0x8c] ss:$16 sps:$4 sm:$0xff]   ;;  %v3265_v19 = vld [vmem:[#allocation12 + $0x80] ss:$16 sps:$4 sm:$0xff]  }
  0x64   :  { %366 = vmatprep.subr.bf16.mxu0 %v3237_v9  ;;  %409 = vmatprep.subr.bf16.mxu1 %v3239_v10  ;;  %4380 = vst [vmem:[#allocation28_spill] sm:$0xff] %v3263_v18  ;;  %4381 = vst [vmem:[#allocation29_spill] sm:$0xff] %v3265_v19  ;;  %v3267_v20 = vld [vmem:[#allocation12 + $0x88] ss:$16 sps:$4 sm:$0xff]   ;;  %v3271_v21 = vld [vmem:[#allocation12 + $0xa4] ss:$16 sps:$4 sm:$0xff]  }
  0x65   :  { %4382 = vst [vmem:[#allocation30_spill] sm:$0xff] %v3267_v20  ;;  %4383 = vst [vmem:[#allocation31_spill] sm:$0xff] %v3271_v21  ;;  %v3275_v22 = vld [vmem:[#allocation12 + $0xac] ss:$16 sps:$4 sm:$0xff]   ;;  %v3277_v23 = vld [vmem:[#allocation12 + $0xa0] ss:$16 sps:$4 sm:$0xff]  }
  0x66   :  { %4384 = vst [vmem:[#allocation32_spill] sm:$0xff] %v3275_v22  ;;  %4385 = vst [vmem:[#allocation33_spill] sm:$0xff] %v3277_v23  ;;  %v3281_v24 = vld [vmem:[#allocation12 + $0xa8] ss:$16 sps:$4 sm:$0xff]   ;;  %v3283_v25 = vld [vmem:[#allocation12 + $0xc4] ss:$16 sps:$4 sm:$0xff]  }
  0x67   :  { %367 = vmatpush1.bf16.msra.mxu0 %v3241_v11  ;;  %410 = vmatpush1.bf16.msra.mxu1 %v3243_v12  ;;  %4386 = vst [vmem:[#allocation34_spill] sm:$0xff] %v3281_v24  ;;  %4387 = vst [vmem:[#allocation35_spill] sm:$0xff] %v3283_v25  ;;  %v3287_v26 = vld [vmem:[#allocation12 + $0xcc] ss:$16 sps:$4 sm:$0xff]   ;;  %v3289_v27 = vld [vmem:[#allocation12 + $0xc0] ss:$16 sps:$4 sm:$0xff]  }
  0x68   :  { %368 = vmatprep.subr.bf16.mxu0 %v3247_v13  ;;  %411 = vmatprep.subr.bf16.mxu1 %v3251_v14  ;;  %4388 = vst [vmem:[#allocation36_spill] sm:$0xff] %v3287_v26  ;;  %4389 = vst [vmem:[#allocation37_spill] sm:$0xff] %v3289_v27  ;;  %v3293_v28 = vld [vmem:[#allocation12 + $0xc8] ss:$16 sps:$4 sm:$0xff]   ;;  %v3295_v29 = vld [vmem:[#allocation12 + $0xe4] ss:$16 sps:$4 sm:$0xff]  }
  0x69   :  { %4390 = vst [vmem:[#allocation38_spill] sm:$0xff] %v3293_v28  ;;  %4391 = vst [vmem:[#allocation39_spill] sm:$0xff] %v3295_v29  ;;  %v3299_v30 = vld [vmem:[#allocation12 + $0xec] ss:$16 sps:$4 sm:$0xff]   ;;  %v3301_v31 = vld [vmem:[#allocation12 + $0xe0] ss:$16 sps:$4 sm:$0xff]  }
  0x6a   :  { %4392 = vst [vmem:[#allocation40_spill] sm:$0xff] %v3299_v30  ;;  %4393 = vst [vmem:[#allocation41_spill] sm:$0xff] %v3301_v31  ;;  %v3303_v32 = vld [vmem:[#allocation12 + $0xe8] ss:$16 sps:$4 sm:$0xff]   ;;  %v101_v33 = vld [vmem:[#allocation7] sm:$0xff]  ;;  %s3091_s29 = smov [#allocation16]  }
  0x6b   :  { %369 = vmatpush1.bf16.msra.mxu0 %v3253_v15  ;;  %412 = vmatpush1.bf16.msra.mxu1 %v3257_v16  ;;  %4394 = vst [vmem:[#allocation42_spill] sm:$0xff] %v3303_v32  ;;  %v3309_v35 = vld [vmem:[#allocation10 + $0x4] ss:$16 sps:$4 sm:$0xff]   ;;  %v3311_v36 = vld [vmem:[#allocation10 + $0xc] ss:$16 sps:$4 sm:$0xff]   ;;  %v201_v37 = vpack.c.bf16 %v102_v34, %v101_v33  ;;  %s2414_s9 = sshll.u32 %s3091_s29, 4  ;;  %s4208_s9 = int_to_ptr.vmem [resolvable:$true] %s2414_s9 }
  0x6c   :  { %370 = vmatprep.subr.bf16.mxu0 %v3259_v17  ;;  %413 = vmatprep.subr.bf16.mxu1 %v3263_v18  ;;  %4395 = vst [vmem:[#allocation43_spill] sm:$0xff] %v3309_v35  ;;  %4396 = vst [vmem:[#allocation44_spill] sm:$0xff] %v3311_v36  ;;  %v3313_v38 = vld [vmem:[#allocation10] ss:$16 sps:$4 sm:$0xff]   ;;  %v3317_v39 = vld [vmem:[#allocation10 + $0x8] ss:$16 sps:$4 sm:$0xff]  }
  0x6d   :  { %v3319_v40 = vld [vmem:[#allocation10 + $0x24] ss:$16 sps:$4 sm:$0xff]   ;;  %v3323_v41 = vld [vmem:[#allocation10 + $0x2c] ss:$16 sps:$4 sm:$0xff]   ;;  %v3325_v42 = vld [vmem:[#allocation10 + $0x20] ss:$16 sps:$4 sm:$0xff]  }
  0x6e   :  { %v3329_v43 = vld [vmem:[#allocation10 + $0x28] ss:$16 sps:$4 sm:$0xff]   ;;  %v3333_v44 = vld [vmem:[#allocation10 + $0x44] ss:$16 sps:$4 sm:$0xff]   ;;  %v3335_v45 = vld [vmem:[#allocation10 + $0x4c] ss:$16 sps:$4 sm:$0xff]  }
  0x6f   :  { %371 = vmatpush1.bf16.msra.mxu0 %v3265_v19  ;;  %414 = vmatpush1.bf16.msra.mxu1 %v3267_v20  ;;  %v3339_v46 = vld [vmem:[#allocation10 + $0x40] ss:$16 sps:$4 sm:$0xff]   ;;  %v3343_v47 = vld [vmem:[#allocation10 + $0x48] ss:$16 sps:$4 sm:$0xff]   ;;  %v3345_v48 = vld [vmem:[#allocation10 + $0x64] ss:$16 sps:$4 sm:$0xff]  }
  0x70   :  { %372 = vmatprep.subr.bf16.mxu0 %v3271_v21  ;;  %415 = vmatprep.subr.bf16.mxu1 %v3275_v22  ;;  %v3349_v49 = vld [vmem:[#allocation10 + $0x6c] ss:$16 sps:$4 sm:$0xff]   ;;  %v3351_v50 = vld [vmem:[#allocation10 + $0x60] ss:$16 sps:$4 sm:$0xff]   ;;  %v3353_v51 = vld [vmem:[#allocation10 + $0x68] ss:$16 sps:$4 sm:$0xff]  }
  0x71   :  { %v3357_v52 = vld [vmem:[#allocation10 + $0x84] ss:$16 sps:$4 sm:$0xff]   ;;  %v3359_v53 = vld [vmem:[#allocation10 + $0x8c] ss:$16 sps:$4 sm:$0xff]   ;;  %v3363_v54 = vld [vmem:[#allocation10 + $0x80] ss:$16 sps:$4 sm:$0xff]  }
  0x72   :  { %v3365_v55 = vld [vmem:[#allocation10 + $0x88] ss:$16 sps:$4 sm:$0xff]   ;;  %v3371_v56 = vld [vmem:[#allocation10 + $0xa4] ss:$16 sps:$4 sm:$0xff]   ;;  %v3373_v57 = vld [vmem:[#allocation10 + $0xac] ss:$16 sps:$4 sm:$0xff]  }
  0x73   :  { %373 = vmatpush1.bf16.msra.mxu0 %v3277_v23  ;;  %416 = vmatpush1.bf16.msra.mxu1 %v3281_v24  ;;  %v3377_v58 = vld [vmem:[#allocation10 + $0xa0] ss:$16 sps:$4 sm:$0xff]   ;;  %v3379_v59 = vld [vmem:[#allocation10 + $0xa8] ss:$16 sps:$4 sm:$0xff]   ;;  %v3383_v60 = vld [vmem:[#allocation10 + $0xc4] ss:$16 sps:$4 sm:$0xff]  }
  0x74   :  { %374 = vmatprep.subr.bf16.mxu0 %v3283_v25  ;;  %417 = vmatprep.subr.bf16.mxu1 %v3287_v26  ;;  %4397 = vst [vmem:[#allocation45_spill] sm:$0xff] %v3379_v59  ;;  %v3385_v61 = vld [vmem:[#allocation10 + $0xcc] ss:$16 sps:$4 sm:$0xff]   ;;  %v3389_v62 = vld [vmem:[#allocation10 + $0xc0] ss:$16 sps:$4 sm:$0xff]   ;;  %s3092_s10 = smov [#allocation13]  }
  0x75   :  { %v3391_v63 = vld [vmem:[#allocation10 + $0xc8] ss:$16 sps:$4 sm:$0xff]   ;;  %v3395_v33 = vld [vmem:[#allocation10 + $0xe4] ss:$16 sps:$4 sm:$0xff]   ;;  %v3397_v34 = vld [vmem:[#allocation10 + $0xec] ss:$16 sps:$4 sm:$0xff]  }
  0x76   :  { %4398 = vst [vmem:[#allocation46_spill] sm:$0xff] %v3397_v34  ;;  %s2390_s12 = sshll.u32 %s3092_s10, 4  ;;  %s4210_s12 = int_to_ptr.vmem [resolvable:$true] %s2390_s12 }
  0x77   :  { %375 = vmatpush1.bf16.msra.mxu0 %v3289_v27  ;;  %418 = vmatpush1.bf16.msra.mxu1 %v3293_v28 }
  0x78   :  { %376 = vmatprep.subr.bf16.mxu0 %v3295_v29  ;;  %419 = vmatprep.subr.bf16.mxu1 %v3299_v30 }
  0x7b   :  { %377 = vmatpush1.bf16.msra.mxu0 %v3301_v31  ;;  %420 = vmatpush1.bf16.msra.mxu1 %v3303_v32 }
  0x7c   :  { %614 = vmatprep.subr.bf16.mxu0 %v3309_v35  ;;  %657 = vmatprep.subr.bf16.mxu1 %v3311_v36 }
  0x7e   :  { %395 = vmatmul.mubr.bf16.vlgmr.msra.gmra.mrb[0].mxu0 %v201_v37  ;;  %438 = vmatmul.mubr.bf16.vlgmr.msra.gmra.mrb[0].mxu1 %v201_v37  ;;  %v3401_v37 = vld [vmem:[#allocation10 + $0xe0] ss:$16 sps:$4 sm:$0xff]  }
  0x7f   :  { %615 = vmatpush1.bf16.msra.mxu0 %v3313_v38  ;;  %658 = vmatpush1.bf16.msra.mxu1 %v3317_v39 }
  0x80   :  { %616 = vmatprep.subr.bf16.mxu0 %v3319_v40  ;;  %659 = vmatprep.subr.bf16.mxu1 %v3323_v41 }
  0x81   :  { %646 = vmatprep.mubr.bf16.mxu0 %v4276_v0  ;;  %689 = vmatprep.mubr.bf16.mxu1 %v4276_v0  ;;  %v3403_v0 = vld [vmem:[#allocation10 + $0xe8] ss:$16 sps:$4 sm:$0xff]  }
  0x83   :  { %617 = vmatpush1.bf16.msra.mxu0 %v3325_v42  ;;  %660 = vmatpush1.bf16.msra.mxu1 %v3329_v43 }
  0x84   :  { %618 = vmatprep.subr.bf16.mxu0 %v3333_v44  ;;  %661 = vmatprep.subr.bf16.mxu1 %v3335_v45 }
  0x87   :  { %619 = vmatpush1.bf16.msra.mxu0 %v3339_v46  ;;  %662 = vmatpush1.bf16.msra.mxu1 %v3343_v47 }
  0x88   :  { %620 = vmatprep.subr.bf16.mxu0 %v3345_v48  ;;  %663 = vmatprep.subr.bf16.mxu1 %v3349_v49 }
  0x8b   :  { %621 = vmatpush1.bf16.msra.mxu0 %v3351_v50  ;;  %664 = vmatpush1.bf16.msra.mxu1 %v3353_v51 }
  0x8c   :  { %622 = vmatprep.subr.bf16.mxu0 %v3357_v52  ;;  %665 = vmatprep.subr.bf16.mxu1 %v3359_v53 }
  0x8f   :  { %623 = vmatpush1.bf16.msra.mxu0 %v3363_v54  ;;  %666 = vmatpush1.bf16.msra.mxu1 %v3365_v55 }
  0x90   :  { %624 = vmatprep.subr.bf16.mxu0 %v3371_v56  ;;  %667 = vmatprep.subr.bf16.mxu1 %v3373_v57 }
  0x93   :  { %625 = vmatpush1.bf16.msra.mxu0 %v3377_v58  ;;  %668 = vmatpush1.bf16.msra.mxu1 %v3379_v59  ;;  %v2819_v59 = vld [vmem:[#allocation4] sm:$0xff]  }
  0x94   :  { %626 = vmatprep.subr.bf16.mxu0 %v3383_v60  ;;  %669 = vmatprep.subr.bf16.mxu1 %v3385_v61 }
  0x97   :  { %627 = vmatpush1.bf16.msra.mxu0 %v3389_v62  ;;  %670 = vmatpush1.bf16.msra.mxu1 %v3391_v63 }
  0x98   :  { %628 = vmatprep.subr.bf16.mxu0 %v3395_v33  ;;  %671 = vmatprep.subr.bf16.mxu1 %v3397_v34  ;;  %v4399_v34 = vmov 0  }
  0x9b   :  { %629 = vmatpush1.bf16.msra.mxu0 %v3401_v37  ;;  %672 = vmatpush1.bf16.msra.mxu1 %v3403_v0 }
  0x9c   :  { %753 = vmatprep.subr.bf16.mxu0 %v3215_v1  ;;  %796 = vmatprep.subr.bf16.mxu1 %v3217_v2 }
  0x9e   :  { %647 = vmatmul.mubr.bf16.vlgmr.msra.gmra.mrb[0].mxu0 %v2819_v59  ;;  %690 = vmatmul.mubr.bf16.vlgmr.msra.gmra.mrb[0].mxu1 %v2819_v59  ;;  %v175_v59 = vlaneseq }
  0x9f   :  { %754 = vmatpush1.bf16.msra.mxu0 %v3220_v3  ;;  %797 = vmatpush1.bf16.msra.mxu1 %v3222_v4 }
  0xa0   :  { %755 = vmatprep.subr.bf16.mxu0 %v3225_v5  ;;  %798 = vmatprep.subr.bf16.mxu1 %v3229_v6 }
  0xa1   :  { %785 = vmatprep.mubr.bf16.mxu0 %v4399_v34  ;;  %828 = vmatprep.mubr.bf16.mxu1 %v4399_v34 }
  0xa3   :  { %756 = vmatpush1.bf16.msra.mxu0 %v3231_v7  ;;  %799 = vmatpush1.bf16.msra.mxu1 %v3234_v8 }
  0xa4   :  { %757 = vmatprep.subr.bf16.mxu0 %v3237_v9  ;;  %800 = vmatprep.subr.bf16.mxu1 %v3239_v10 }
  0xa7   :  { %758 = vmatpush1.bf16.msra.mxu0 %v3241_v11  ;;  %801 = vmatpush1.bf16.msra.mxu1 %v3243_v12 }
  0xa8   :  { %759 = vmatprep.subr.bf16.mxu0 %v3247_v13  ;;  %802 = vmatprep.subr.bf16.mxu1 %v3251_v14 }
  0xab   :  { %760 = vmatpush1.bf16.msra.mxu0 %v3253_v15  ;;  %803 = vmatpush1.bf16.msra.mxu1 %v3257_v16 }
  0xac   :  { %761 = vmatprep.subr.bf16.mxu0 %v3259_v17  ;;  %804 = vmatprep.subr.bf16.mxu1 %v3263_v18 }
  0xaf   :  { %762 = vmatpush1.bf16.msra.mxu0 %v3265_v19  ;;  %805 = vmatpush1.bf16.msra.mxu1 %v3267_v20 }
  0xb0   :  { %763 = vmatprep.subr.bf16.mxu0 %v3271_v21  ;;  %806 = vmatprep.subr.bf16.mxu1 %v3275_v22 }
  0xb3   :  { %764 = vmatpush1.bf16.msra.mxu0 %v3277_v23  ;;  %807 = vmatpush1.bf16.msra.mxu1 %v3281_v24 }
  0xb4   :  { %765 = vmatprep.subr.bf16.mxu0 %v3283_v25  ;;  %808 = vmatprep.subr.bf16.mxu1 %v3287_v26  ;;  %v176_v25 = vshrl.u32 %v175_v59, 7 }
  0xb6   :  { %v177_v24 = vsub.s32 0, %v176_v25  ;;  %v185_v26 = vsub.s32 2, %v176_v25 }
  0xb7   :  { %766 = vmatpush1.bf16.msra.mxu0 %v3289_v27  ;;  %809 = vmatpush1.bf16.msra.mxu1 %v3293_v28  ;;  %v173_v28 = vld [vmem:[%s4272_s5] sm:$0xf]  ;;  %v181_v27 = vsub.s32 1, %v176_v25  ;;  %s3090_s5 = smov [#allocation14]  }
  0xb8   :  { %767 = vmatprep.subr.bf16.mxu0 %v3295_v29  ;;  %810 = vmatprep.subr.bf16.mxu1 %v3299_v30  ;;  %v3448_v29 = vrot.slane %v173_v28, %v177_v24  ;;  %v3450_v30 = vrot.slane %v173_v28, %v185_v26  ;;  %v105_v26 = vld [vmem:[#allocation9] sm:$0xff]  ;;  %s2402_s28 = sshll.u32 %s3090_s5, 4  ;;  %s2403_s28 = int_to_ptr.vmem [resolvable:$true] %s2402_s28 }
  0xb9   :  { %v3452_v23 = vrot.slane %v173_v28, %v181_v27  ;;  %s3001_s13 = scalar_lea.vmem %s2403_s28, 256  ;;  %p3006_p13 = scmp.lt.s32.totalorder %s2403_s28, %s2403_s28 }
  0xba   :  { %4400 = vst [vmem:[#allocation47_spill] sm:$0xff] %v3448_v29  ;;  %4401 = vst [vmem:[#allocation48_spill] sm:$0xff] %v3450_v30  ;;  %p3002_p12 = scmp.ne.s32.totalorder %s2403_s28, %s3001_s13  ;;  %p3007_p0 = scmp.lt.s32.totalorder %s3001_s13, %s3001_s13 }
  0xbb   :  { %768 = vmatpush1.bf16.msra.mxu0 %v3301_v31  ;;  %811 = vmatpush1.bf16.msra.mxu1 %v3303_v32  ;;  %v189_v31 = vsub.s32 3, %v176_v25 }
  0xbc   :  { %845 = vmatprep.subr.bf16.mxu0 %v3309_v35  ;;  %888 = vmatprep.subr.bf16.mxu1 %v3311_v36  ;;  %p3008_p1 = por %p3007_p0, %p3006_p13 }
  0xbd   :  { %v3456_v21 = vrot.slane %v173_v28, %v189_v31 }
  0xbe   :  { %p3009_p2 = pnand %p3008_p1, %p3002_p12 }
 0x171   :  { %v648_v32 = vpop.f32.mrb[0].mxu0  ;;  %v691_v35 = vpop.f32.mrb[0].mxu1 }
 0x172   :  { %v700_v36 = vadd.f32 %v648_v32, %v3448_v29  ;;  %v702_v59 = vadd.f32 %v691_v35, %v3450_v30  ;;  %v650_v22 = vpop.f32.mrb[1].mxu0  ;;  %v693_v20 = vpop.f32.mrb[1].mxu1  ;;  %v4328_v32 = vmov 0.0  }
 0x173   :  { %v701_v19 = vadd.f32 %v650_v22, %v3452_v23  ;;  %v652_v18 = vpop.f32.mrb[2].mxu0  ;;  %v695_v24 = vpop.f32.mrb[2].mxu1  ;;  %v703_v15 = vadd.f32 %v693_v20, %v3456_v21 }
 0x174   :  { %vm708_vm0 = vcmp.ge.f32.partialorder %v700_v36, 0.0  ;;  %vm710_vm1 = vcmp.ge.f32.partialorder %v702_v59, 0.0  ;;  %v704_v25 = vadd.f32 %v652_v18, %v3448_v29  ;;  %v706_v27 = vadd.f32 %v695_v24, %v3450_v30  ;;  %v654_v17 = vpop.f32.mrb[3].mxu0  ;;  %v697_v16 = vpop.f32.mrb[3].mxu1  ;;  %v106_v30 = vld [vmem:[#allocation9 + $0x8] sm:$0xff] }
 0x175   :  { %v2500_v35 = vsel %vm708_vm0, 1.0, %v4328_v32  ;;  %v2502_v28 = vsel %vm710_vm1, 1.0, %v4328_v32  ;;  %vm709_vm2 = vcmp.ge.f32.partialorder %v701_v19, 0.0  ;;  %v705_v18 = vadd.f32 %v654_v17, %v3452_v23 }
 0x176   :  { %v734_v31 = vmul.f32 %v2502_v28, %v2500_v35  ;;  %v2501_v22 = vsel %vm709_vm2, 1.0, %v4328_v32  ;;  %vm712_vm3 = vcmp.ge.f32.partialorder %v704_v25, 0.0  ;;  %vm714_vm4 = vcmp.ge.f32.partialorder %v706_v27, 0.0 }
 0x177   :  { %v732_v36 = vmul.f32 %v2501_v22, %v105_v26  ;;  %v2504_v59 = vsel %vm712_vm3, 1.0, %v4328_v32  ;;  %v2506_v24 = vsel %vm714_vm4, 1.0, %v4328_v32  ;;  %v707_v29 = vadd.f32 %v697_v16, %v3456_v21  ;;  %v4405_v22 = vld [vmem:[#allocation25_spill] sm:$0xff] }
 0x178   :  { %v735_v19 = vmul.f32 %v2506_v24, %v2504_v59  ;;  %vm713_vm5 = vcmp.ge.f32.partialorder %v705_v18, 0.0  ;;  %vm711_vm6 = vcmp.ge.f32.partialorder %v703_v15, 0.0  ;;  %v4402_v15 = vld [vmem:[#allocation45_spill] sm:$0xff]  ;;  %v4407_v59 = vld [vmem:[#allocation27_spill] sm:$0xff]  ;;  %v4408_v18 = vld [vmem:[#allocation28_spill] sm:$0xff] }
 0x179   :  { %v3469_v14 = vadd.f32 %v734_v31, %v732_v36  ;;  %v2505_v35 = vsel %vm713_vm5, 1.0, %v4328_v32  ;;  %vm715_vm7 = vcmp.ge.f32.partialorder %v707_v29, 0.0  ;;  %v2503_v25 = vsel %vm711_vm6, 1.0, %v4328_v32  ;;  %v4403_v29 = vld [vmem:[#allocation46_spill] sm:$0xff]  ;;  %v4404_v31 = vld [vmem:[#allocation24_spill] sm:$0xff]  ;;  %v4409_v24 = vld [vmem:[#allocation29_spill] sm:$0xff] }
 0x17a   :  { %v733_v20 = vmul.f32 %v2505_v35, %v106_v30  ;;  %v2507_v17 = vsel %vm715_vm7, 1.0, %v4328_v32  ;;  %v2820_v30 = vld [vmem:[#allocation4 + $0x8] sm:$0xff]   ;;  %v4406_v36 = vld [vmem:[#allocation26_spill] sm:$0xff] }
 0x17b   :  { %v738_v27 = vmul.f32 %v2503_v25, %v3469_v14  ;;  %v4411_v35 = vld [vmem:[#allocation31_spill] sm:$0xff]  ;;  %v4413_v25 = vld [vmem:[#allocation33_spill] sm:$0xff] }
 0x17c   :  { %v3472_v26 = vadd.f32 %v735_v19, %v733_v20  ;;  %v4410_v19 = vld [vmem:[#allocation30_spill] sm:$0xff]  ;;  %v4412_v20 = vld [vmem:[#allocation32_spill] sm:$0xff]  ;;  %v4419_v32 = vld [vmem:[#allocation39_spill] sm:$0xff] }
 0x17e   :  { %v739_v28 = vmul.f32 %v2507_v17, %v3472_v26  ;;  %v4414_v17 = vld [vmem:[#allocation34_spill] sm:$0xff] }
 0x180   :  { %v740_v16 = vpack.c.bf16 %v739_v28, %v738_v27  ;;  %v4415_v27 = vld [vmem:[#allocation35_spill] sm:$0xff]  ;;  %v4416_v28 = vld [vmem:[#allocation36_spill] sm:$0xff] }
 0x182   :  { %2607 = vst [vmem:[#allocation13] sm:$0xff] %v740_v16   ;;  %786 = vmatmul.mubr.bf16.vlgmr.msra.gmra.mrb[4].mxu0 %v740_v16  ;;  %829 = vmatmul.mubr.bf16.vlgmr.msra.gmra.mrb[4].mxu1 %v740_v16  ;;  %v4417_v16 = vld [vmem:[#allocation37_spill] sm:$0xff] }
 0x183   :  { %846 = vmatpush1.bf16.msra.mxu0 %v3313_v38  ;;  %889 = vmatpush1.bf16.msra.mxu1 %v3317_v39 }
 0x184   :  { %847 = vmatprep.subr.bf16.mxu0 %v3319_v40  ;;  %890 = vmatprep.subr.bf16.mxu1 %v3323_v41 }
 0x185   :  { %877 = vmatprep.mubr.bf16.mxu0 %v4399_v34  ;;  %920 = vmatprep.mubr.bf16.mxu1 %v4399_v34 }
 0x187   :  { %848 = vmatpush1.bf16.msra.mxu0 %v3325_v42  ;;  %891 = vmatpush1.bf16.msra.mxu1 %v3329_v43 }
 0x188   :  { %849 = vmatprep.subr.bf16.mxu0 %v3333_v44  ;;  %892 = vmatprep.subr.bf16.mxu1 %v3335_v45 }
 0x18b   :  { %850 = vmatpush1.bf16.msra.mxu0 %v3339_v46  ;;  %893 = vmatpush1.bf16.msra.mxu1 %v3343_v47 }
 0x18c   :  { %851 = vmatprep.subr.bf16.mxu0 %v3345_v48  ;;  %894 = vmatprep.subr.bf16.mxu1 %v3349_v49 }
 0x18f   :  { %852 = vmatpush1.bf16.msra.mxu0 %v3351_v50  ;;  %895 = vmatpush1.bf16.msra.mxu1 %v3353_v51 }
 0x190   :  { %853 = vmatprep.subr.bf16.mxu0 %v3357_v52  ;;  %896 = vmatprep.subr.bf16.mxu1 %v3359_v53 }
 0x193   :  { %854 = vmatpush1.bf16.msra.mxu0 %v3363_v54  ;;  %897 = vmatpush1.bf16.msra.mxu1 %v3365_v55 }
 0x194   :  { %855 = vmatprep.subr.bf16.mxu0 %v3371_v56  ;;  %898 = vmatprep.subr.bf16.mxu1 %v3373_v57 }
 0x197   :  { %856 = vmatpush1.bf16.msra.mxu0 %v3377_v58  ;;  %899 = vmatpush1.bf16.msra.mxu1 %v4402_v15 }
 0x198   :  { %857 = vmatprep.subr.bf16.mxu0 %v3383_v60  ;;  %900 = vmatprep.subr.bf16.mxu1 %v3385_v61 }
 0x19b   :  { %858 = vmatpush1.bf16.msra.mxu0 %v3389_v62  ;;  %901 = vmatpush1.bf16.msra.mxu1 %v3391_v63 }
 0x19c   :  { %859 = vmatprep.subr.bf16.mxu0 %v3395_v33  ;;  %902 = vmatprep.subr.bf16.mxu1 %v4403_v29 }
 0x19f   :  { %860 = vmatpush1.bf16.msra.mxu0 %v3401_v37  ;;  %903 = vmatpush1.bf16.msra.mxu1 %v3403_v0 }
 0x1a0   :  { %985 = vmatprep.subr.bf16.mxu0 %v3215_v1  ;;  %1028 = vmatprep.subr.bf16.mxu1 %v3217_v2 }
 0x1a2   :  { %878 = vmatmul.mubr.bf16.vlgmr.msra.gmra.mrb[4].mxu0 %v2820_v30  ;;  %921 = vmatmul.mubr.bf16.vlgmr.msra.gmra.mrb[4].mxu1 %v2820_v30  ;;  %v4418_v30 = vld [vmem:[#allocation38_spill] sm:$0xff] }
 0x1a3   :  { %986 = vmatpush1.bf16.msra.mxu0 %v3220_v3  ;;  %1029 = vmatpush1.bf16.msra.mxu1 %v3222_v4 }
 0x1a4   :  { %987 = vmatprep.subr.bf16.mxu0 %v3225_v5  ;;  %1030 = vmatprep.subr.bf16.mxu1 %v3229_v6 }
 0x1a5   :  { %1017 = vmatprep.mubr.bf16.mxu0 %v4399_v34  ;;  %1060 = vmatprep.mubr.bf16.mxu1 %v4399_v34 }
 0x1a7   :  { %988 = vmatpush1.bf16.msra.mxu0 %v3231_v7  ;;  %1031 = vmatpush1.bf16.msra.mxu1 %v3234_v8 }
 0x1a8   :  { %989 = vmatprep.subr.bf16.mxu0 %v3237_v9  ;;  %1032 = vmatprep.subr.bf16.mxu1 %v3239_v10 }
 0x1ab   :  { %990 = vmatpush1.bf16.msra.mxu0 %v3241_v11  ;;  %1033 = vmatpush1.bf16.msra.mxu1 %v3243_v12 }
 0x1ac   :  { %991 = vmatprep.subr.bf16.mxu0 %v3247_v13  ;;  %1034 = vmatprep.subr.bf16.mxu1 %v4404_v31  ;;  %v4427_v31 = vmov 0.0  }
 0x1af   :  { %992 = vmatpush1.bf16.msra.mxu0 %v4405_v22  ;;  %1035 = vmatpush1.bf16.msra.mxu1 %v4406_v36 }
 0x1b0   :  { %993 = vmatprep.subr.bf16.mxu0 %v4407_v59  ;;  %1036 = vmatprep.subr.bf16.mxu1 %v4408_v18  ;;  %v4425_v18 = vld [vmem:[#allocation47_spill] sm:$0xff]  ;;  %v4426_v59 = vld [vmem:[#allocation48_spill] sm:$0xff] }
 0x1b3   :  { %994 = vmatpush1.bf16.msra.mxu0 %v4409_v24  ;;  %1037 = vmatpush1.bf16.msra.mxu1 %v4410_v19  ;;  %v4420_v24 = vld [vmem:[#allocation40_spill] sm:$0xff]  ;;  %v4421_v19 = vld [vmem:[#allocation41_spill] sm:$0xff] }
 0x1b4   :  { %995 = vmatprep.subr.bf16.mxu0 %v4411_v35  ;;  %1038 = vmatprep.subr.bf16.mxu1 %v4412_v20  ;;  %v4422_v35 = vld [vmem:[#allocation42_spill] sm:$0xff]  ;;  %v4423_v20 = vld [vmem:[#allocation43_spill] sm:$0xff] }
 0x1b7   :  { %996 = vmatpush1.bf16.msra.mxu0 %v4413_v25  ;;  %1039 = vmatpush1.bf16.msra.mxu1 %v4414_v17  ;;  %v4424_v25 = vld [vmem:[#allocation44_spill] sm:$0xff] }
 0x1b8   :  { %997 = vmatprep.subr.bf16.mxu0 %v4415_v27  ;;  %1040 = vmatprep.subr.bf16.mxu1 %v4416_v28 }
 0x1bb   :  { %998 = vmatpush1.bf16.msra.mxu0 %v4417_v16  ;;  %1041 = vmatpush1.bf16.msra.mxu1 %v4418_v30 }
 0x1bc   :  { %999 = vmatprep.subr.bf16.mxu0 %v4419_v32  ;;  %1042 = vmatprep.subr.bf16.mxu1 %v4420_v24 }
 0x1bf   :  { %1000 = vmatpush1.bf16.msra.mxu0 %v4421_v19  ;;  %1043 = vmatpush1.bf16.msra.mxu1 %v4422_v35 }
 0x1c0   :  { %1077 = vmatprep.subr.bf16.mxu0 %v4423_v20  ;;  %1120 = vmatprep.subr.bf16.mxu1 %v4424_v25 }
 0x275   :  { %v879_v17 = vpop.f32.mrb[4].mxu0  ;;  %v922_v27 = vpop.f32.mrb[4].mxu1 }
 0x276   :  { %v931_v28 = vadd.f32 %v879_v17, %v4425_v18  ;;  %v933_v16 = vadd.f32 %v922_v27, %v4426_v59  ;;  %v881_v36 = vpop.f32.mrb[5].mxu0  ;;  %v924_v30 = vpop.f32.mrb[5].mxu1 }
 0x277   :  { %v932_v32 = vadd.f32 %v881_v36, %v3452_v23  ;;  %v883_v22 = vpop.f32.mrb[6].mxu0  ;;  %v926_v24 = vpop.f32.mrb[6].mxu1  ;;  %v934_v36 = vadd.f32 %v924_v30, %v3456_v21 }
 0x278   :  { %vm939_vm8 = vcmp.ge.f32.partialorder %v931_v28, 0.0  ;;  %vm941_vm9 = vcmp.ge.f32.partialorder %v933_v16, 0.0  ;;  %v935_v35 = vadd.f32 %v883_v22, %v4425_v18  ;;  %v937_v20 = vadd.f32 %v926_v24, %v4426_v59  ;;  %v885_v19 = vpop.f32.mrb[7].mxu0  ;;  %v928_v25 = vpop.f32.mrb[7].mxu1 }
 0x279   :  { %v2511_v13 = vsel %vm939_vm8, 1.0, %v4427_v31  ;;  %v2513_v17 = vsel %vm941_vm9, 1.0, %v4427_v31  ;;  %vm940_vm10 = vcmp.ge.f32.partialorder %v932_v32, 0.0  ;;  %v936_v22 = vadd.f32 %v885_v19, %v3452_v23 }
 0x27a   :  { %v965_v27 = vmul.f32 %v2513_v17, %v2511_v13  ;;  %v2512_v12 = vsel %vm940_vm10, 1.0, %v4427_v31  ;;  %vm943_vm11 = vcmp.ge.f32.partialorder %v935_v35, 0.0  ;;  %vm945_vm12 = vcmp.ge.f32.partialorder %v937_v20, 0.0  ;;  %v4440_v17 = vld [vmem:[#allocation34_spill] sm:$0xff] }
 0x27b   :  { %v963_v28 = vmul.f32 %v2512_v12, %v3469_v14  ;;  %v2515_v16 = vsel %vm943_vm11, 1.0, %v4427_v31  ;;  %v2517_v24 = vsel %vm945_vm12, 1.0, %v4427_v31  ;;  %v938_v59 = vadd.f32 %v928_v25, %v3456_v21 }
 0x27c   :  { %v966_v32 = vmul.f32 %v2517_v24, %v2515_v16  ;;  %vm944_vm13 = vcmp.ge.f32.partialorder %v936_v22, 0.0  ;;  %vm942_vm14 = vcmp.ge.f32.partialorder %v934_v36, 0.0  ;;  %v4442_v36 = vld [vmem:[#allocation36_spill] sm:$0xff]  ;;  %v4444_v16 = vld [vmem:[#allocation38_spill] sm:$0xff]  ;;  %v4445_v22 = vld [vmem:[#allocation39_spill] sm:$0xff] }
 0x27d   :  { %v3560_v18 = vadd.f32 %v965_v27, %v963_v28  ;;  %v2516_v13 = vsel %vm944_vm13, 1.0, %v4427_v31  ;;  %vm946_vm15 = vcmp.ge.f32.partialorder %v938_v59, 0.0  ;;  %v2514_v14 = vsel %vm942_vm14, 1.0, %v4427_v31  ;;  %v4439_v59 = vld [vmem:[#allocation33_spill] sm:$0xff]  ;;  %v4441_v27 = vld [vmem:[#allocation35_spill] sm:$0xff]  ;;  %v4446_v24 = vld [vmem:[#allocation40_spill] sm:$0xff] }
 0x27e   :  { %v964_v35 = vmul.f32 %v2516_v13, %v3472_v26  ;;  %v2518_v19 = vsel %vm946_vm15, 1.0, %v4427_v31  ;;  %v2821_v26 = vld [vmem:[#allocation4 + $0x10] sm:$0xff]   ;;  %v4443_v28 = vld [vmem:[#allocation37_spill] sm:$0xff]  ;;  %v4448_v13 = vld [vmem:[#allocation42_spill] sm:$0xff] }
 0x27f   :  { %v969_v20 = vmul.f32 %v2514_v14, %v3560_v18  ;;  %v4450_v14 = vld [vmem:[#allocation44_spill] sm:$0xff] }
 0x280   :  { %v3564_v12 = vadd.f32 %v966_v32, %v964_v35  ;;  %v4447_v32 = vld [vmem:[#allocation41_spill] sm:$0xff]  ;;  %v4449_v35 = vld [vmem:[#allocation43_spill] sm:$0xff] }
 0x282   :  { %v970_v25 = vmul.f32 %v2518_v19, %v3564_v12 }
 0x284   :  { %v971_v30 = vpack.c.bf16 %v970_v25, %v969_v20  ;;  %v4451_v25 = vld [vmem:[#allocation47_spill] sm:$0xff] }
 0x286   :  { %2612 = vst [vmem:[#allocation13 + $0x8] sm:$0xff] %v971_v30   ;;  %1018 = vmatmul.mubr.bf16.vlgmr.msra.gmra.mrb[8].mxu0 %v971_v30  ;;  %1061 = vmatmul.mubr.bf16.vlgmr.msra.gmra.mrb[8].mxu1 %v971_v30 }
 0x287   :  { %1078 = vmatpush1.bf16.msra.mxu0 %v3313_v38  ;;  %1121 = vmatpush1.bf16.msra.mxu1 %v3317_v39 }
 0x288   :  { %1079 = vmatprep.subr.bf16.mxu0 %v3319_v40  ;;  %1122 = vmatprep.subr.bf16.mxu1 %v3323_v41 }
 0x289   :  { %1109 = vmatprep.mubr.bf16.mxu0 %v4399_v34  ;;  %1152 = vmatprep.mubr.bf16.mxu1 %v4399_v34 }
 0x28b   :  { %1080 = vmatpush1.bf16.msra.mxu0 %v3325_v42  ;;  %1123 = vmatpush1.bf16.msra.mxu1 %v3329_v43 }
 0x28c   :  { %1081 = vmatprep.subr.bf16.mxu0 %v3333_v44  ;;  %1124 = vmatprep.subr.bf16.mxu1 %v3335_v45 }
 0x28f   :  { %1082 = vmatpush1.bf16.msra.mxu0 %v3339_v46  ;;  %1125 = vmatpush1.bf16.msra.mxu1 %v3343_v47 }
 0x290   :  { %1083 = vmatprep.subr.bf16.mxu0 %v3345_v48  ;;  %1126 = vmatprep.subr.bf16.mxu1 %v3349_v49 }
 0x293   :  { %1084 = vmatpush1.bf16.msra.mxu0 %v3351_v50  ;;  %1127 = vmatpush1.bf16.msra.mxu1 %v3353_v51 }
 0x294   :  { %1085 = vmatprep.subr.bf16.mxu0 %v3357_v52  ;;  %1128 = vmatprep.subr.bf16.mxu1 %v3359_v53 }
 0x297   :  { %1086 = vmatpush1.bf16.msra.mxu0 %v3363_v54  ;;  %1129 = vmatpush1.bf16.msra.mxu1 %v3365_v55 }
 0x298   :  { %1087 = vmatprep.subr.bf16.mxu0 %v3371_v56  ;;  %1130 = vmatprep.subr.bf16.mxu1 %v3373_v57 }
 0x29b   :  { %1088 = vmatpush1.bf16.msra.mxu0 %v3377_v58  ;;  %1131 = vmatpush1.bf16.msra.mxu1 %v4402_v15 }
 0x29c   :  { %1089 = vmatprep.subr.bf16.mxu0 %v3383_v60  ;;  %1132 = vmatprep.subr.bf16.mxu1 %v3385_v61 }
 0x29f   :  { %1090 = vmatpush1.bf16.msra.mxu0 %v3389_v62  ;;  %1133 = vmatpush1.bf16.msra.mxu1 %v3391_v63 }
 0x2a0   :  { %1091 = vmatprep.subr.bf16.mxu0 %v3395_v33  ;;  %1134 = vmatprep.subr.bf16.mxu1 %v4403_v29 }
 0x2a3   :  { %1092 = vmatpush1.bf16.msra.mxu0 %v3401_v37  ;;  %1135 = vmatpush1.bf16.msra.mxu1 %v3403_v0 }
 0x2a4   :  { %1217 = vmatprep.subr.bf16.mxu0 %v3215_v1  ;;  %1260 = vmatprep.subr.bf16.mxu1 %v3217_v2  ;;  %v4428_v1 = vld [vmem:[#allocation22_spill] sm:$0xff]  ;;  %v4429_v2 = vld [vmem:[#allocation23_spill] sm:$0xff] }
 0x2a6   :  { %1110 = vmatmul.mubr.bf16.vlgmr.msra.gmra.mrb[8].mxu0 %v2821_v26  ;;  %1153 = vmatmul.mubr.bf16.vlgmr.msra.gmra.mrb[8].mxu1 %v2821_v26  ;;  %v4452_v26 = vld [vmem:[#allocation48_spill] sm:$0xff] }
 0x2a7   :  { %1218 = vmatpush1.bf16.msra.mxu0 %v3220_v3  ;;  %1261 = vmatpush1.bf16.msra.mxu1 %v3222_v4  ;;  %v4430_v3 = vld [vmem:[#allocation24_spill] sm:$0xff]  ;;  %v4431_v4 = vld [vmem:[#allocation25_spill] sm:$0xff] }
 0x2a8   :  { %1219 = vmatprep.subr.bf16.mxu0 %v3225_v5  ;;  %1262 = vmatprep.subr.bf16.mxu1 %v3229_v6  ;;  %v4432_v5 = vld [vmem:[#allocation26_spill] sm:$0xff]  ;;  %v4433_v6 = vld [vmem:[#allocation27_spill] sm:$0xff] }
 0x2a9   :  { %1249 = vmatprep.mubr.bf16.mxu0 %v4399_v34  ;;  %1292 = vmatprep.mubr.bf16.mxu1 %v4399_v34 }
 0x2ab   :  { %1220 = vmatpush1.bf16.msra.mxu0 %v3231_v7  ;;  %1263 = vmatpush1.bf16.msra.mxu1 %v3234_v8  ;;  %v4434_v7 = vld [vmem:[#allocation28_spill] sm:$0xff]  ;;  %v4435_v8 = vld [vmem:[#allocation29_spill] sm:$0xff] }
 0x2ac   :  { %1221 = vmatprep.subr.bf16.mxu0 %v3237_v9  ;;  %1264 = vmatprep.subr.bf16.mxu1 %v3239_v10  ;;  %v4436_v9 = vld [vmem:[#allocation30_spill] sm:$0xff]  ;;  %v4437_v10 = vld [vmem:[#allocation31_spill] sm:$0xff] }
 0x2af   :  { %1222 = vmatpush1.bf16.msra.mxu0 %v3241_v11  ;;  %1265 = vmatpush1.bf16.msra.mxu1 %v4428_v1  ;;  %v4438_v11 = vld [vmem:[#allocation32_spill] sm:$0xff] }
 0x2b0   :  { %1223 = vmatprep.subr.bf16.mxu0 %v4429_v2  ;;  %1266 = vmatprep.subr.bf16.mxu1 %v4430_v3 }
 0x2b3   :  { %1224 = vmatpush1.bf16.msra.mxu0 %v4431_v4  ;;  %1267 = vmatpush1.bf16.msra.mxu1 %v4432_v5 }
 0x2b4   :  { %1225 = vmatprep.subr.bf16.mxu0 %v4433_v6  ;;  %1268 = vmatprep.subr.bf16.mxu1 %v4434_v7 }
 0x2b7   :  { %1226 = vmatpush1.bf16.msra.mxu0 %v4435_v8  ;;  %1269 = vmatpush1.bf16.msra.mxu1 %v4436_v9 }
 0x2b8   :  { %1227 = vmatprep.subr.bf16.mxu0 %v4437_v10  ;;  %1270 = vmatprep.subr.bf16.mxu1 %v4438_v11 }
 0x2bb   :  { %1228 = vmatpush1.bf16.msra.mxu0 %v4439_v59  ;;  %1271 = vmatpush1.bf16.msra.mxu1 %v4440_v17 }
 0x2bc   :  { %1229 = vmatprep.subr.bf16.mxu0 %v4441_v27  ;;  %1272 = vmatprep.subr.bf16.mxu1 %v4442_v36 }
 0x2bf   :  { %1230 = vmatpush1.bf16.msra.mxu0 %v4443_v28  ;;  %1273 = vmatpush1.bf16.msra.mxu1 %v4444_v16 }
 0x2c0   :  { %1231 = vmatprep.subr.bf16.mxu0 %v4445_v22  ;;  %1274 = vmatprep.subr.bf16.mxu1 %v4446_v24 }
 0x2c3   :  { %1232 = vmatpush1.bf16.msra.mxu0 %v4447_v32  ;;  %1275 = vmatpush1.bf16.msra.mxu1 %v4448_v13 }
 0x2c4   :  { %1309 = vmatprep.subr.bf16.mxu0 %v4449_v35  ;;  %1352 = vmatprep.subr.bf16.mxu1 %v4450_v14 }
 0x379   :  { %v1111_v19 = vpop.f32.mrb[8].mxu0  ;;  %v1154_v20 = vpop.f32.mrb[8].mxu1 }
 0x37a   :  { %v1163_v30 = vadd.f32 %v1111_v19, %v4451_v25  ;;  %v1165_v1 = vadd.f32 %v1154_v20, %v4452_v26  ;;  %v1113_v2 = vpop.f32.mrb[9].mxu0  ;;  %v1156_v3 = vpop.f32.mrb[9].mxu1 }
 0x37b   :  { %v1164_v4 = vadd.f32 %v1113_v2, %v3452_v23  ;;  %v1115_v5 = vpop.f32.mrb[10].mxu0  ;;  %v1158_v6 = vpop.f32.mrb[10].mxu1  ;;  %v1166_v36 = vadd.f32 %v1156_v3, %v3456_v21 }
 0x37c   :  { %vm1171_vm0 = vcmp.ge.f32.partialorder %v1163_v30, 0.0  ;;  %vm1173_vm1 = vcmp.ge.f32.partialorder %v1165_v1, 0.0  ;;  %v1167_v7 = vadd.f32 %v1115_v5, %v4451_v25  ;;  %v1169_v8 = vadd.f32 %v1158_v6, %v4452_v26  ;;  %v1117_v9 = vpop.f32.mrb[11].mxu0  ;;  %v1160_v10 = vpop.f32.mrb[11].mxu1  ;;  %v3738_v6 = vld [vmem:[#allocation12 + $0x60] ss:$16 sps:$4 sm:$0xff]  }
 0x37d   :  { %v2522_v11 = vsel %vm1171_vm0, 1.0, %v4427_v31  ;;  %v2524_v59 = vsel %vm1173_vm1, 1.0, %v4427_v31  ;;  %vm1172_vm2 = vcmp.ge.f32.partialorder %v1164_v4, 0.0  ;;  %v1168_v22 = vadd.f32 %v1117_v9, %v3452_v23  ;;  %4456 = vst [vmem:[#allocation23_spill] sm:$0xff] %v3738_v6  ;;  %v3747_v9 = vld [vmem:[#allocation12 + $0x8c] ss:$16 sps:$4 sm:$0xff]  }
 0x37e   :  { %v1197_v17 = vmul.f32 %v2524_v59, %v2522_v11  ;;  %v2523_v27 = vsel %vm1172_vm2, 1.0, %v4427_v31  ;;  %vm1175_vm3 = vcmp.ge.f32.partialorder %v1167_v7, 0.0  ;;  %vm1177_vm4 = vcmp.ge.f32.partialorder %v1169_v8, 0.0  ;;  %v3741_v7 = vld [vmem:[#allocation12 + $0x68] ss:$16 sps:$4 sm:$0xff]   ;;  %4459 = vst [vmem:[#allocation26_spill] sm:$0xff] %v3747_v9 }
 0x37f   :  { %v1195_v28 = vmul.f32 %v2523_v27, %v3560_v18  ;;  %v2526_v16 = vsel %vm1175_vm3, 1.0, %v4427_v31  ;;  %v2528_v24 = vsel %vm1177_vm4, 1.0, %v4427_v31  ;;  %v1170_v32 = vadd.f32 %v1160_v10, %v3456_v21  ;;  %4457 = vst [vmem:[#allocation24_spill] sm:$0xff] %v3741_v7  ;;  %v3744_v8 = vld [vmem:[#allocation12 + $0x84] ss:$16 sps:$4 sm:$0xff]  }
 0x380   :  { %v1198_v19 = vmul.f32 %v2528_v24, %v2526_v16  ;;  %vm1176_vm5 = vcmp.ge.f32.partialorder %v1168_v22, 0.0  ;;  %vm1174_vm6 = vcmp.ge.f32.partialorder %v1166_v36, 0.0  ;;  %4458 = vst [vmem:[#allocation25_spill] sm:$0xff] %v3744_v8  ;;  %v3750_v10 = vld [vmem:[#allocation12 + $0x80] ss:$16 sps:$4 sm:$0xff]  }
 0x381   :  { %v3652_v13 = vadd.f32 %v1197_v17, %v1195_v28  ;;  %v2527_v20 = vsel %vm1176_vm5, 1.0, %v4427_v31  ;;  %vm1178_vm7 = vcmp.ge.f32.partialorder %v1170_v32, 0.0  ;;  %v2525_v1 = vsel %vm1174_vm6, 1.0, %v4427_v31  ;;  %4460 = vst [vmem:[#allocation27_spill] sm:$0xff] %v3750_v10  ;;  %v3753_v11 = vld [vmem:[#allocation12 + $0x88] ss:$16 sps:$4 sm:$0xff]  }
 0x382   :  { %v1196_v30 = vmul.f32 %v2527_v20, %v3564_v12  ;;  %v2529_v2 = vsel %vm1178_vm7, 1.0, %v4427_v31  ;;  %v3735_v12 = vld [vmem:[#allocation12 + $0x6c] ss:$16 sps:$4 sm:$0xff]   ;;  %4461 = vst [vmem:[#allocation28_spill] sm:$0xff] %v3753_v11  ;;  %v3756_v59 = vld [vmem:[#allocation12 + $0xa4] ss:$16 sps:$4 sm:$0xff]  }
 0x383   :  { %v1201_v3 = vmul.f32 %v2525_v1, %v3652_v13  ;;  %4455 = vst [vmem:[#allocation22_spill] sm:$0xff] %v3735_v12  ;;  %4462 = vst [vmem:[#allocation29_spill] sm:$0xff] %v3756_v59  ;;  %v3759_v17 = vld [vmem:[#allocation12 + $0xac] ss:$16 sps:$4 sm:$0xff]   ;;  %v3762_v27 = vld [vmem:[#allocation12 + $0xa0] ss:$16 sps:$4 sm:$0xff]  }
 0x384   :  { %v3656_v18 = vadd.f32 %v1198_v19, %v1196_v30  ;;  %4463 = vst [vmem:[#allocation30_spill] sm:$0xff] %v3759_v17  ;;  %4464 = vst [vmem:[#allocation31_spill] sm:$0xff] %v3762_v27  ;;  %v3765_v36 = vld [vmem:[#allocation12 + $0xa8] ss:$16 sps:$4 sm:$0xff]   ;;  %v3768_v28 = vld [vmem:[#allocation12 + $0xc4] ss:$16 sps:$4 sm:$0xff]  }
 0x385   :  { %4465 = vst [vmem:[#allocation32_spill] sm:$0xff] %v3765_v36  ;;  %4466 = vst [vmem:[#allocation33_spill] sm:$0xff] %v3768_v28  ;;  %v3771_v16 = vld [vmem:[#allocation12 + $0xcc] ss:$16 sps:$4 sm:$0xff]   ;;  %v3774_v22 = vld [vmem:[#allocation12 + $0xc0] ss:$16 sps:$4 sm:$0xff]  }
 0x386   :  { %v1202_v4 = vmul.f32 %v2529_v2, %v3656_v18  ;;  %4467 = vst [vmem:[#allocation34_spill] sm:$0xff] %v3771_v16  ;;  %4468 = vst [vmem:[#allocation35_spill] sm:$0xff] %v3774_v22  ;;  %v3777_v24 = vld [vmem:[#allocation12 + $0xc8] ss:$16 sps:$4 sm:$0xff]   ;;  %v3780_v32 = vld [vmem:[#allocation12 + $0xe4] ss:$16 sps:$4 sm:$0xff]  }
 0x387   :  { %4469 = vst [vmem:[#allocation36_spill] sm:$0xff] %v3777_v24  ;;  %4470 = vst [vmem:[#allocation37_spill] sm:$0xff] %v3780_v32  ;;  %v3783_v19 = vld [vmem:[#allocation12 + $0xec] ss:$16 sps:$4 sm:$0xff]   ;;  %v3786_v20 = vld [vmem:[#allocation12 + $0xe0] ss:$16 sps:$4 sm:$0xff]  }
 0x388   :  { %v1203_v5 = vpack.c.bf16 %v1202_v4, %v1201_v3  ;;  %4471 = vst [vmem:[#allocation38_spill] sm:$0xff] %v3783_v19  ;;  %4472 = vst [vmem:[#allocation39_spill] sm:$0xff] %v3786_v20  ;;  %v3789_v30 = vld [vmem:[#allocation12 + $0xe8] ss:$16 sps:$4 sm:$0xff]  }
 0x389   :  { %4473 = vst [vmem:[#allocation40_spill] sm:$0xff] %v3789_v30 }
 0x38a   :  { %2617 = vst [vmem:[#allocation13 + $0x10] sm:$0xff] %v1203_v5   ;;  %1250 = vmatmul.mubr.bf16.vlgmr.msra.gmra.mrb[12].mxu0 %v1203_v5  ;;  %1293 = vmatmul.mubr.bf16.vlgmr.msra.gmra.mrb[12].mxu1 %v1203_v5 }
 0x38b   :  { %1310 = vmatpush1.bf16.msra.mxu0 %v3313_v38  ;;  %1353 = vmatpush1.bf16.msra.mxu1 %v3317_v39  ;;  %v2822_v38 = vld [vmem:[#allocation4 + $0x18] sm:$0xff]   ;;  %v3694_v39 = vld [vmem:[#allocation12 + $0x4] ss:$16 sps:$4 sm:$0xff]  }
 0x38c   :  { %1311 = vmatprep.subr.bf16.mxu0 %v3319_v40  ;;  %1354 = vmatprep.subr.bf16.mxu1 %v3323_v41  ;;  %v3697_v40 = vld [vmem:[#allocation12 + $0xc] ss:$16 sps:$4 sm:$0xff]   ;;  %v3700_v41 = vld [vmem:[#allocation12] ss:$16 sps:$4 sm:$0xff]  }
 0x38d   :  { %1341 = vmatprep.mubr.bf16.mxu0 %v4399_v34  ;;  %1384 = vmatprep.mubr.bf16.mxu1 %v4399_v34 }
 0x38f   :  { %1312 = vmatpush1.bf16.msra.mxu0 %v3325_v42  ;;  %1355 = vmatpush1.bf16.msra.mxu1 %v3329_v43  ;;  %v3703_v42 = vld [vmem:[#allocation12 + $0x8] ss:$16 sps:$4 sm:$0xff]   ;;  %v3706_v43 = vld [vmem:[#allocation12 + $0x24] ss:$16 sps:$4 sm:$0xff]  }
 0x390   :  { %1313 = vmatprep.subr.bf16.mxu0 %v3333_v44  ;;  %1356 = vmatprep.subr.bf16.mxu1 %v3335_v45  ;;  %v3709_v44 = vld [vmem:[#allocation12 + $0x2c] ss:$16 sps:$4 sm:$0xff]   ;;  %v3714_v45 = vld [vmem:[#allocation12 + $0x20] ss:$16 sps:$4 sm:$0xff]  }
 0x393   :  { %1314 = vmatpush1.bf16.msra.mxu0 %v3339_v46  ;;  %1357 = vmatpush1.bf16.msra.mxu1 %v3343_v47  ;;  %v3717_v46 = vld [vmem:[#allocation12 + $0x28] ss:$16 sps:$4 sm:$0xff]   ;;  %v3720_v47 = vld [vmem:[#allocation12 + $0x44] ss:$16 sps:$4 sm:$0xff]  }
 0x394   :  { %1315 = vmatprep.subr.bf16.mxu0 %v3345_v48  ;;  %1358 = vmatprep.subr.bf16.mxu1 %v3349_v49  ;;  %v3723_v48 = vld [vmem:[#allocation12 + $0x4c] ss:$16 sps:$4 sm:$0xff]   ;;  %v3726_v49 = vld [vmem:[#allocation12 + $0x40] ss:$16 sps:$4 sm:$0xff]  }
 0x397   :  { %1316 = vmatpush1.bf16.msra.mxu0 %v3351_v50  ;;  %1359 = vmatpush1.bf16.msra.mxu1 %v3353_v51  ;;  %v3729_v50 = vld [vmem:[#allocation12 + $0x48] ss:$16 sps:$4 sm:$0xff]   ;;  %v3732_v51 = vld [vmem:[#allocation12 + $0x64] ss:$16 sps:$4 sm:$0xff]  }
 0x398   :  { %1317 = vmatprep.subr.bf16.mxu0 %v3357_v52  ;;  %1360 = vmatprep.subr.bf16.mxu1 %v3359_v53  ;;  %4453 = vst [vmem:[#allocation45_spill] sm:$0xff] %v3729_v50  ;;  %4454 = vst [vmem:[#allocation46_spill] sm:$0xff] %v3732_v51 }
 0x39b   :  { %1318 = vmatpush1.bf16.msra.mxu0 %v3363_v54  ;;  %1361 = vmatpush1.bf16.msra.mxu1 %v3365_v55 }
 0x39c   :  { %1319 = vmatprep.subr.bf16.mxu0 %v3371_v56  ;;  %1362 = vmatprep.subr.bf16.mxu1 %v3373_v57 }
 0x39f   :  { %1320 = vmatpush1.bf16.msra.mxu0 %v3377_v58  ;;  %1363 = vmatpush1.bf16.msra.mxu1 %v4402_v15 }
 0x3a0   :  { %1321 = vmatprep.subr.bf16.mxu0 %v3383_v60  ;;  %1364 = vmatprep.subr.bf16.mxu1 %v3385_v61 }
 0x3a3   :  { %1322 = vmatpush1.bf16.msra.mxu0 %v3389_v62  ;;  %1365 = vmatpush1.bf16.msra.mxu1 %v3391_v63 }
 0x3a4   :  { %1323 = vmatprep.subr.bf16.mxu0 %v3395_v33  ;;  %1366 = vmatprep.subr.bf16.mxu1 %v4403_v29 }
 0x3a7   :  { %1324 = vmatpush1.bf16.msra.mxu0 %v3401_v37  ;;  %1367 = vmatpush1.bf16.msra.mxu1 %v3403_v0 }
 0x3a8   :  { %1449 = vmatprep.subr.bf16.mxu0 %v3694_v39  ;;  %1492 = vmatprep.subr.bf16.mxu1 %v3697_v40 }
 0x3aa   :  { %1342 = vmatmul.mubr.bf16.vlgmr.msra.gmra.mrb[12].mxu0 %v2822_v38  ;;  %1385 = vmatmul.mubr.bf16.vlgmr.msra.gmra.mrb[12].mxu1 %v2822_v38 }
 0x3ab   :  { %1450 = vmatpush1.bf16.msra.mxu0 %v3700_v41  ;;  %1493 = vmatpush1.bf16.msra.mxu1 %v3703_v42 }
 0x3ac   :  { %1451 = vmatprep.subr.bf16.mxu0 %v3706_v43  ;;  %1494 = vmatprep.subr.bf16.mxu1 %v3709_v44 }
 0x3ad   :  { %1481 = vmatprep.mubr.bf16.mxu0 %v4399_v34  ;;  %1524 = vmatprep.mubr.bf16.mxu1 %v4399_v34 }
 0x3af   :  { %1452 = vmatpush1.bf16.msra.mxu0 %v3714_v45  ;;  %1495 = vmatpush1.bf16.msra.mxu1 %v3717_v46 }
 0x3b0   :  { %1453 = vmatprep.subr.bf16.mxu0 %v3720_v47  ;;  %1496 = vmatprep.subr.bf16.mxu1 %v3723_v48 }
 0x3b3   :  { %1454 = vmatpush1.bf16.msra.mxu0 %v3726_v49  ;;  %1497 = vmatpush1.bf16.msra.mxu1 %v3729_v50 }
 0x3b4   :  { %1455 = vmatprep.subr.bf16.mxu0 %v3732_v51  ;;  %1498 = vmatprep.subr.bf16.mxu1 %v3735_v12 }
 0x3b7   :  { %1456 = vmatpush1.bf16.msra.mxu0 %v3738_v6  ;;  %1499 = vmatpush1.bf16.msra.mxu1 %v3741_v7 }
 0x3b8   :  { %1457 = vmatprep.subr.bf16.mxu0 %v3744_v8  ;;  %1500 = vmatprep.subr.bf16.mxu1 %v3747_v9 }
 0x3bb   :  { %1458 = vmatpush1.bf16.msra.mxu0 %v3750_v10  ;;  %1501 = vmatpush1.bf16.msra.mxu1 %v3753_v11 }
 0x3bc   :  { %1459 = vmatprep.subr.bf16.mxu0 %v3756_v59  ;;  %1502 = vmatprep.subr.bf16.mxu1 %v3759_v17 }
 0x3bf   :  { %1460 = vmatpush1.bf16.msra.mxu0 %v3762_v27  ;;  %1503 = vmatpush1.bf16.msra.mxu1 %v3765_v36 }
 0x3c0   :  { %1461 = vmatprep.subr.bf16.mxu0 %v3768_v28  ;;  %1504 = vmatprep.subr.bf16.mxu1 %v3771_v16 }
 0x3c3   :  { %1462 = vmatpush1.bf16.msra.mxu0 %v3774_v22  ;;  %1505 = vmatpush1.bf16.msra.mxu1 %v3777_v24 }
 0x3c4   :  { %1463 = vmatprep.subr.bf16.mxu0 %v3780_v32  ;;  %1506 = vmatprep.subr.bf16.mxu1 %v3783_v19 }
 0x3c7   :  { %1464 = vmatpush1.bf16.msra.mxu0 %v3786_v20  ;;  %1507 = vmatpush1.bf16.msra.mxu1 %v3789_v30 }
 0x3c8   :  { %1541 = vmatprep.subr.bf16.mxu0 %v4449_v35  ;;  %1584 = vmatprep.subr.bf16.mxu1 %v4450_v14 }
 0x47d   :  { %v1343_v1 = vpop.f32.mrb[12].mxu0  ;;  %v1386_v2 = vpop.f32.mrb[12].mxu1 }
 0x47e   :  { %v1395_v3 = vadd.f32 %v1343_v1, %v4451_v25  ;;  %v1397_v4 = vadd.f32 %v1386_v2, %v4452_v26  ;;  %v1345_v5 = vpop.f32.mrb[13].mxu0  ;;  %v1388_v38 = vpop.f32.mrb[13].mxu1 }
 0x47f   :  { %v1396_v19 = vadd.f32 %v1345_v5, %v3452_v23  ;;  %v1347_v32 = vpop.f32.mrb[14].mxu0  ;;  %v1390_v20 = vpop.f32.mrb[14].mxu1  ;;  %v1398_v5 = vadd.f32 %v1388_v38, %v3456_v21 }
 0x480   :  { %vm1403_vm8 = vcmp.ge.f32.partialorder %v1395_v3, 0.0  ;;  %vm1405_vm9 = vcmp.ge.f32.partialorder %v1397_v4, 0.0  ;;  %v1399_v30 = vadd.f32 %v1347_v32, %v4451_v25  ;;  %v1401_v35 = vadd.f32 %v1390_v20, %v4452_v26  ;;  %v1349_v24 = vpop.f32.mrb[15].mxu0  ;;  %v1392_v14 = vpop.f32.mrb[15].mxu1 }
 0x481   :  { %v2533_v22 = vsel %vm1403_vm8, 1.0, %v4427_v31  ;;  %v2535_v1 = vsel %vm1405_vm9, 1.0, %v4427_v31  ;;  %vm1404_vm10 = vcmp.ge.f32.partialorder %v1396_v19, 0.0  ;;  %v1400_v32 = vadd.f32 %v1349_v24, %v3452_v23 }
 0x482   :  { %v1429_v2 = vmul.f32 %v2535_v1, %v2533_v22  ;;  %v2534_v16 = vsel %vm1404_vm10, 1.0, %v4427_v31  ;;  %vm1407_vm11 = vcmp.ge.f32.partialorder %v1399_v30, 0.0  ;;  %vm1409_vm12 = vcmp.ge.f32.partialorder %v1401_v35, 0.0  ;;  %v3818_v1 = vld [vmem:[#allocation10] ss:$16 sps:$4 sm:$0xff]  }
 0x483   :  { %v1427_v3 = vmul.f32 %v2534_v16, %v3652_v13  ;;  %v2537_v4 = vsel %vm1407_vm11, 1.0, %v4427_v31  ;;  %v2539_v20 = vsel %vm1409_vm12, 1.0, %v4427_v31  ;;  %v1402_v26 = vadd.f32 %v1392_v14, %v3456_v21 }
 0x484   :  { %v1430_v19 = vmul.f32 %v2539_v20, %v2537_v4  ;;  %vm1408_vm13 = vcmp.ge.f32.partialorder %v1400_v32, 0.0  ;;  %vm1406_vm14 = vcmp.ge.f32.partialorder %v1398_v5, 0.0  ;;  %v3832_v5 = vld [vmem:[#allocation10 + $0x20] ss:$16 sps:$4 sm:$0xff]   ;;  %v3838_v4 = vld [vmem:[#allocation10 + $0x44] ss:$16 sps:$4 sm:$0xff]  }
 0x485   :  { %v3808_v25 = vadd.f32 %v1429_v2, %v1427_v3  ;;  %v2538_v22 = vsel %vm1408_vm13, 1.0, %v4427_v31  ;;  %vm1410_vm15 = vcmp.ge.f32.partialorder %v1402_v26, 0.0  ;;  %v2536_v16 = vsel %vm1406_vm14, 1.0, %v4427_v31  ;;  %v3824_v26 = vld [vmem:[#allocation10 + $0x24] ss:$16 sps:$4 sm:$0xff]  }
 0x486   :  { %v1428_v30 = vmul.f32 %v2538_v22, %v3656_v18  ;;  %v2540_v24 = vsel %vm1410_vm15, 1.0, %v4427_v31  ;;  %v3821_v18 = vld [vmem:[#allocation10 + $0x8] ss:$16 sps:$4 sm:$0xff]   ;;  %v3827_v2 = vld [vmem:[#allocation10 + $0x2c] ss:$16 sps:$4 sm:$0xff]  }
 0x487   :  { %v1433_v38 = vmul.f32 %v2536_v16, %v3808_v25  ;;  %v3835_v3 = vld [vmem:[#allocation10 + $0x28] ss:$16 sps:$4 sm:$0xff]   ;;  %v3841_v32 = vld [vmem:[#allocation10 + $0x4c] ss:$16 sps:$4 sm:$0xff]   ;;  %v3844_v20 = vld [vmem:[#allocation10 + $0x40] ss:$16 sps:$4 sm:$0xff]  }
 0x488   :  { %v3812_v13 = vadd.f32 %v1430_v19, %v1428_v30  ;;  %v3847_v19 = vld [vmem:[#allocation10 + $0x48] ss:$16 sps:$4 sm:$0xff]   ;;  %v3850_v22 = vld [vmem:[#allocation10 + $0x64] ss:$16 sps:$4 sm:$0xff]   ;;  %v3853_v30 = vld [vmem:[#allocation10 + $0x6c] ss:$16 sps:$4 sm:$0xff]  }
 0x489   :  { %v3856_v16 = vld [vmem:[#allocation10 + $0x60] ss:$16 sps:$4 sm:$0xff]  }
 0x48a   :  { %v1434_v35 = vmul.f32 %v2540_v24, %v3812_v13  ;;  %v3859_v24 = vld [vmem:[#allocation10 + $0x68] ss:$16 sps:$4 sm:$0xff]  }
 0x48c   :  { %v1435_v14 = vpack.c.bf16 %v1434_v35, %v1433_v38 }
 0x48e   :  { %2622 = vst [vmem:[#allocation13 + $0x18] sm:$0xff] %v1435_v14   ;;  %1482 = vmatmul.mubr.bf16.vlgmr.msra.gmra.mrb[16].mxu0 %v1435_v14  ;;  %1525 = vmatmul.mubr.bf16.vlgmr.msra.gmra.mrb[16].mxu1 %v1435_v14 }
 0x48f   :  { %1542 = vmatpush1.bf16.msra.mxu0 %v3818_v1  ;;  %1585 = vmatpush1.bf16.msra.mxu1 %v3821_v18 }
 0x490   :  { %1543 = vmatprep.subr.bf16.mxu0 %v3824_v26  ;;  %1586 = vmatprep.subr.bf16.mxu1 %v3827_v2 }
 0x491   :  { %1573 = vmatprep.mubr.bf16.mxu0 %v4399_v34  ;;  %1616 = vmatprep.mubr.bf16.mxu1 %v4399_v34 }
 0x493   :  { %1544 = vmatpush1.bf16.msra.mxu0 %v3832_v5  ;;  %1587 = vmatpush1.bf16.msra.mxu1 %v3835_v3 }
 0x494   :  { %1545 = vmatprep.subr.bf16.mxu0 %v3838_v4  ;;  %1588 = vmatprep.subr.bf16.mxu1 %v3841_v32 }
 0x497   :  { %1546 = vmatpush1.bf16.msra.mxu0 %v3844_v20  ;;  %1589 = vmatpush1.bf16.msra.mxu1 %v3847_v19 }
 0x498   :  { %1547 = vmatprep.subr.bf16.mxu0 %v3850_v22  ;;  %1590 = vmatprep.subr.bf16.mxu1 %v3853_v30 }
 0x49b   :  { %1548 = vmatpush1.bf16.msra.mxu0 %v3856_v16  ;;  %1591 = vmatpush1.bf16.msra.mxu1 %v3859_v24 }
 0x49c   :  { %1549 = vmatprep.subr.bf16.mxu0 %v3357_v52  ;;  %1592 = vmatprep.subr.bf16.mxu1 %v3359_v53  ;;  %v2823_v52 = vld [vmem:[#allocation4 + $0x20] sm:$0xff]   ;;  %v4475_v53 = vld [vmem:[#allocation35_spill] sm:$0xff] }
 0x49f   :  { %1550 = vmatpush1.bf16.msra.mxu0 %v3363_v54  ;;  %1593 = vmatpush1.bf16.msra.mxu1 %v3365_v55  ;;  %v4476_v54 = vld [vmem:[#allocation36_spill] sm:$0xff]  ;;  %v4477_v55 = vld [vmem:[#allocation37_spill] sm:$0xff] }
 0x4a0   :  { %1551 = vmatprep.subr.bf16.mxu0 %v3371_v56  ;;  %1594 = vmatprep.subr.bf16.mxu1 %v3373_v57  ;;  %v4478_v56 = vld [vmem:[#allocation38_spill] sm:$0xff]  ;;  %v4479_v57 = vld [vmem:[#allocation39_spill] sm:$0xff] }
 0x4a3   :  { %1552 = vmatpush1.bf16.msra.mxu0 %v3377_v58  ;;  %1595 = vmatpush1.bf16.msra.mxu1 %v4402_v15  ;;  %v4480_v58 = vld [vmem:[#allocation40_spill] sm:$0xff] }
 0x4a4   :  { %1553 = vmatprep.subr.bf16.mxu0 %v3383_v60  ;;  %1596 = vmatprep.subr.bf16.mxu1 %v3385_v61  ;;  %v3912_v60 = vld [vmem:[#allocation10 + $0x4] ss:$16 sps:$4 sm:$0xff]   ;;  %v3915_v61 = vld [vmem:[#allocation10 + $0xc] ss:$16 sps:$4 sm:$0xff]  }
 0x4a5   :  { %4481 = vst [vmem:[#allocation41_spill] sm:$0xff] %v3912_v60  ;;  %4482 = vst [vmem:[#allocation42_spill] sm:$0xff] %v3915_v61  ;;  %v4484_v15 = vld [vmem:[#allocation48_spill] sm:$0xff] }
 0x4a7   :  { %1554 = vmatpush1.bf16.msra.mxu0 %v3389_v62  ;;  %1597 = vmatpush1.bf16.msra.mxu1 %v3391_v63 }
 0x4a8   :  { %1555 = vmatprep.subr.bf16.mxu0 %v3395_v33  ;;  %1598 = vmatprep.subr.bf16.mxu1 %v4403_v29  ;;  %v4483_v33 = vld [vmem:[#allocation47_spill] sm:$0xff] }
 0x4ab   :  { %1556 = vmatpush1.bf16.msra.mxu0 %v3401_v37  ;;  %1599 = vmatpush1.bf16.msra.mxu1 %v3403_v0  ;;  %v4474_v0 = vld [vmem:[#allocation34_spill] sm:$0xff] }
 0x4ac   :  { %1681 = vmatprep.subr.bf16.mxu0 %v3694_v39  ;;  %1724 = vmatprep.subr.bf16.mxu1 %v3697_v40 }
 0x4ae   :  { %1574 = vmatmul.mubr.bf16.vlgmr.msra.gmra.mrb[16].mxu0 %v2823_v52  ;;  %1617 = vmatmul.mubr.bf16.vlgmr.msra.gmra.mrb[16].mxu1 %v2823_v52 }
 0x4af   :  { %1682 = vmatpush1.bf16.msra.mxu0 %v3700_v41  ;;  %1725 = vmatpush1.bf16.msra.mxu1 %v3703_v42 }
 0x4b0   :  { %1683 = vmatprep.subr.bf16.mxu0 %v3706_v43  ;;  %1726 = vmatprep.subr.bf16.mxu1 %v3709_v44 }
 0x4b1   :  { %1713 = vmatprep.mubr.bf16.mxu0 %v4399_v34  ;;  %1756 = vmatprep.mubr.bf16.mxu1 %v4399_v34 }
 0x4b3   :  { %1684 = vmatpush1.bf16.msra.mxu0 %v3714_v45  ;;  %1727 = vmatpush1.bf16.msra.mxu1 %v3717_v46 }
 0x4b4   :  { %1685 = vmatprep.subr.bf16.mxu0 %v3720_v47  ;;  %1728 = vmatprep.subr.bf16.mxu1 %v3723_v48 }
 0x4b7   :  { %1686 = vmatpush1.bf16.msra.mxu0 %v3726_v49  ;;  %1729 = vmatpush1.bf16.msra.mxu1 %v3729_v50 }
 0x4b8   :  { %1687 = vmatprep.subr.bf16.mxu0 %v3732_v51  ;;  %1730 = vmatprep.subr.bf16.mxu1 %v3735_v12 }
 0x4bb   :  { %1688 = vmatpush1.bf16.msra.mxu0 %v3738_v6  ;;  %1731 = vmatpush1.bf16.msra.mxu1 %v3741_v7 }
 0x4bc   :  { %1689 = vmatprep.subr.bf16.mxu0 %v3744_v8  ;;  %1732 = vmatprep.subr.bf16.mxu1 %v3747_v9 }
 0x4bf   :  { %1690 = vmatpush1.bf16.msra.mxu0 %v3750_v10  ;;  %1733 = vmatpush1.bf16.msra.mxu1 %v3753_v11 }
 0x4c0   :  { %1691 = vmatprep.subr.bf16.mxu0 %v3756_v59  ;;  %1734 = vmatprep.subr.bf16.mxu1 %v3759_v17 }
 0x4c3   :  { %1692 = vmatpush1.bf16.msra.mxu0 %v3762_v27  ;;  %1735 = vmatpush1.bf16.msra.mxu1 %v3765_v36 }
 0x4c4   :  { %1693 = vmatprep.subr.bf16.mxu0 %v3768_v28  ;;  %1736 = vmatprep.subr.bf16.mxu1 %v4474_v0 }
 0x4c7   :  { %1694 = vmatpush1.bf16.msra.mxu0 %v4475_v53  ;;  %1737 = vmatpush1.bf16.msra.mxu1 %v4476_v54 }
 0x4c8   :  { %1695 = vmatprep.subr.bf16.mxu0 %v4477_v55  ;;  %1738 = vmatprep.subr.bf16.mxu1 %v4478_v56 }
 0x4cb   :  { %1696 = vmatpush1.bf16.msra.mxu0 %v4479_v57  ;;  %1739 = vmatpush1.bf16.msra.mxu1 %v4480_v58 }
 0x4cc   :  { %1773 = vmatprep.subr.bf16.mxu0 %v3912_v60  ;;  %1816 = vmatprep.subr.bf16.mxu1 %v3915_v61 }
 0x581   :  { %v1575_v62 = vpop.f32.mrb[16].mxu0  ;;  %v1618_v63 = vpop.f32.mrb[16].mxu1 }
 0x582   :  { %v1627_v37 = vadd.f32 %v1575_v62, %v4483_v33  ;;  %v1629_v29 = vadd.f32 %v1618_v63, %v4484_v15  ;;  %v1577_v38 = vpop.f32.mrb[17].mxu0  ;;  %v1620_v35 = vpop.f32.mrb[17].mxu1 }
 0x583   :  { %v1628_v14 = vadd.f32 %v1577_v38, %v3452_v23  ;;  %v1579_v52 = vpop.f32.mrb[18].mxu0  ;;  %v1622_v58 = vpop.f32.mrb[18].mxu1  ;;  %v1630_v38 = vadd.f32 %v1620_v35, %v3456_v21 }
 0x584   :  { %vm1635_vm0 = vcmp.ge.f32.partialorder %v1627_v37, 0.0  ;;  %vm1637_vm1 = vcmp.ge.f32.partialorder %v1629_v29, 0.0  ;;  %v1631_v60 = vadd.f32 %v1579_v52, %v4483_v33  ;;  %v1633_v57 = vadd.f32 %v1622_v58, %v4484_v15  ;;  %v1581_v56 = vpop.f32.mrb[19].mxu0  ;;  %v1624_v61 = vpop.f32.mrb[19].mxu1 }
 0x585   :  { %v2544_v55 = vsel %vm1635_vm0, 1.0, %v4427_v31  ;;  %v2546_v62 = vsel %vm1637_vm1, 1.0, %v4427_v31  ;;  %vm1636_vm2 = vcmp.ge.f32.partialorder %v1628_v14, 0.0  ;;  %v1632_v58 = vadd.f32 %v1581_v56, %v3452_v23 }
 0x586   :  { %v1661_v63 = vmul.f32 %v2546_v62, %v2544_v55  ;;  %v2545_v54 = vsel %vm1636_vm2, 1.0, %v4427_v31  ;;  %vm1639_vm3 = vcmp.ge.f32.partialorder %v1631_v60, 0.0  ;;  %vm1641_vm4 = vcmp.ge.f32.partialorder %v1633_v57, 0.0  ;;  %v3964_v62 = vld [vmem:[#allocation10 + $0x80] ss:$16 sps:$4 sm:$0xff]  }
 0x587   :  { %v1659_v37 = vmul.f32 %v2545_v54, %v3808_v25  ;;  %v2548_v29 = vsel %vm1639_vm3, 1.0, %v4427_v31  ;;  %v2550_v52 = vsel %vm1641_vm4, 1.0, %v4427_v31  ;;  %v1634_v15 = vadd.f32 %v1624_v61, %v3456_v21 }
 0x588   :  { %v1662_v14 = vmul.f32 %v2550_v52, %v2548_v29  ;;  %vm1640_vm5 = vcmp.ge.f32.partialorder %v1632_v58, 0.0  ;;  %vm1638_vm6 = vcmp.ge.f32.partialorder %v1630_v38, 0.0  ;;  %v3970_v38 = vld [vmem:[#allocation10 + $0xa4] ss:$16 sps:$4 sm:$0xff]   ;;  %v3976_v29 = vld [vmem:[#allocation10 + $0xa0] ss:$16 sps:$4 sm:$0xff]  }
 0x589   :  { %v3932_v33 = vadd.f32 %v1661_v63, %v1659_v37  ;;  %v2549_v55 = vsel %vm1640_vm5, 1.0, %v4427_v31  ;;  %vm1642_vm7 = vcmp.ge.f32.partialorder %v1634_v15, 0.0  ;;  %v2547_v54 = vsel %vm1638_vm6, 1.0, %v4427_v31  ;;  %v3961_v15 = vld [vmem:[#allocation10 + $0x8c] ss:$16 sps:$4 sm:$0xff]  }
 0x58a   :  { %v1660_v60 = vmul.f32 %v2549_v55, %v3812_v13  ;;  %v2551_v56 = vsel %vm1642_vm7, 1.0, %v4427_v31  ;;  %v3958_v13 = vld [vmem:[#allocation10 + $0x84] ss:$16 sps:$4 sm:$0xff]   ;;  %v3967_v63 = vld [vmem:[#allocation10 + $0x88] ss:$16 sps:$4 sm:$0xff]  }
 0x58b   :  { %v1665_v57 = vmul.f32 %v2547_v54, %v3932_v33  ;;  %v3973_v37 = vld [vmem:[#allocation10 + $0xac] ss:$16 sps:$4 sm:$0xff]   ;;  %v3979_v58 = vld [vmem:[#allocation10 + $0xa8] ss:$16 sps:$4 sm:$0xff]   ;;  %v3982_v52 = vld [vmem:[#allocation10 + $0xc4] ss:$16 sps:$4 sm:$0xff]  }
 0x58c   :  { %v3936_v25 = vadd.f32 %v1662_v14, %v1660_v60  ;;  %v3985_v14 = vld [vmem:[#allocation10 + $0xcc] ss:$16 sps:$4 sm:$0xff]   ;;  %v3988_v55 = vld [vmem:[#allocation10 + $0xc0] ss:$16 sps:$4 sm:$0xff]   ;;  %v3991_v60 = vld [vmem:[#allocation10 + $0xc8] ss:$16 sps:$4 sm:$0xff]  }
 0x58d   :  { %v3994_v54 = vld [vmem:[#allocation10 + $0xe4] ss:$16 sps:$4 sm:$0xff]  }
 0x58e   :  { %v1666_v61 = vmul.f32 %v2551_v56, %v3936_v25  ;;  %v3997_v56 = vld [vmem:[#allocation10 + $0xec] ss:$16 sps:$4 sm:$0xff]  }
 0x590   :  { %v1667_v35 = vpack.c.bf16 %v1666_v61, %v1665_v57  ;;  %v2824_v57 = vld [vmem:[#allocation4 + $0x28] sm:$0xff]   ;;  %v4000_v61 = vld [vmem:[#allocation10 + $0xe0] ss:$16 sps:$4 sm:$0xff]  }
 0x592   :  { %2627 = vst [vmem:[#allocation13 + $0x20] sm:$0xff] %v1667_v35   ;;  %1714 = vmatmul.mubr.bf16.vlgmr.msra.gmra.mrb[20].mxu0 %v1667_v35  ;;  %1757 = vmatmul.mubr.bf16.vlgmr.msra.gmra.mrb[20].mxu1 %v1667_v35  ;;  %v4003_v35 = vld [vmem:[#allocation10 + $0xe8] ss:$16 sps:$4 sm:$0xff]  }
 0x593   :  { %1774 = vmatpush1.bf16.msra.mxu0 %v3818_v1  ;;  %1817 = vmatpush1.bf16.msra.mxu1 %v3821_v18 }
 0x594   :  { %1775 = vmatprep.subr.bf16.mxu0 %v3824_v26  ;;  %1818 = vmatprep.subr.bf16.mxu1 %v3827_v2 }
 0x595   :  { %1805 = vmatprep.mubr.bf16.mxu0 %v4399_v34  ;;  %1848 = vmatprep.mubr.bf16.mxu1 %v4399_v34 }
 0x597   :  { %1776 = vmatpush1.bf16.msra.mxu0 %v3832_v5  ;;  %1819 = vmatpush1.bf16.msra.mxu1 %v3835_v3 }
 0x598   :  { %1777 = vmatprep.subr.bf16.mxu0 %v3838_v4  ;;  %1820 = vmatprep.subr.bf16.mxu1 %v3841_v32 }
 0x59b   :  { %1778 = vmatpush1.bf16.msra.mxu0 %v3844_v20  ;;  %1821 = vmatpush1.bf16.msra.mxu1 %v3847_v19 }
 0x59c   :  { %1779 = vmatprep.subr.bf16.mxu0 %v3850_v22  ;;  %1822 = vmatprep.subr.bf16.mxu1 %v3853_v30 }
 0x59f   :  { %1780 = vmatpush1.bf16.msra.mxu0 %v3856_v16  ;;  %1823 = vmatpush1.bf16.msra.mxu1 %v3859_v24 }
 0x5a0   :  { %1781 = vmatprep.subr.bf16.mxu0 %v3958_v13  ;;  %1824 = vmatprep.subr.bf16.mxu1 %v3961_v15 }
 0x5a3   :  { %1782 = vmatpush1.bf16.msra.mxu0 %v3964_v62  ;;  %1825 = vmatpush1.bf16.msra.mxu1 %v3967_v63 }
 0x5a4   :  { %1783 = vmatprep.subr.bf16.mxu0 %v3970_v38  ;;  %1826 = vmatprep.subr.bf16.mxu1 %v3973_v37 }
 0x5a7   :  { %1784 = vmatpush1.bf16.msra.mxu0 %v3976_v29  ;;  %1827 = vmatpush1.bf16.msra.mxu1 %v3979_v58 }
 0x5a8   :  { %1785 = vmatprep.subr.bf16.mxu0 %v3982_v52  ;;  %1828 = vmatprep.subr.bf16.mxu1 %v3985_v14 }
 0x5ab   :  { %1786 = vmatpush1.bf16.msra.mxu0 %v3988_v55  ;;  %1829 = vmatpush1.bf16.msra.mxu1 %v3991_v60 }
 0x5ac   :  { %1787 = vmatprep.subr.bf16.mxu0 %v3994_v54  ;;  %1830 = vmatprep.subr.bf16.mxu1 %v3997_v56 }
 0x5af   :  { %1788 = vmatpush1.bf16.msra.mxu0 %v4000_v61  ;;  %1831 = vmatpush1.bf16.msra.mxu1 %v4003_v35 }
 0x5b0   :  { %1913 = vmatprep.subr.bf16.mxu0 %v3694_v39  ;;  %1956 = vmatprep.subr.bf16.mxu1 %v3697_v40 }
 0x5b2   :  { %1806 = vmatmul.mubr.bf16.vlgmr.msra.gmra.mrb[20].mxu0 %v2824_v57  ;;  %1849 = vmatmul.mubr.bf16.vlgmr.msra.gmra.mrb[20].mxu1 %v2824_v57  ;;  %v4485_v57 = vld [vmem:[#allocation36_spill] sm:$0xff] }
 0x5b3   :  { %1914 = vmatpush1.bf16.msra.mxu0 %v3700_v41  ;;  %1957 = vmatpush1.bf16.msra.mxu1 %v3703_v42 }
 0x5b4   :  { %1915 = vmatprep.subr.bf16.mxu0 %v3706_v43  ;;  %1958 = vmatprep.subr.bf16.mxu1 %v3709_v44 }
 0x5b5   :  { %1945 = vmatprep.mubr.bf16.mxu0 %v4399_v34  ;;  %1988 = vmatprep.mubr.bf16.mxu1 %v4399_v34 }
 0x5b7   :  { %1916 = vmatpush1.bf16.msra.mxu0 %v3714_v45  ;;  %1959 = vmatpush1.bf16.msra.mxu1 %v3717_v46 }
 0x5b8   :  { %1917 = vmatprep.subr.bf16.mxu0 %v3720_v47  ;;  %1960 = vmatprep.subr.bf16.mxu1 %v3723_v48 }
 0x5bb   :  { %1918 = vmatpush1.bf16.msra.mxu0 %v3726_v49  ;;  %1961 = vmatpush1.bf16.msra.mxu1 %v3729_v50 }
 0x5bc   :  { %1919 = vmatprep.subr.bf16.mxu0 %v3732_v51  ;;  %1962 = vmatprep.subr.bf16.mxu1 %v3735_v12 }
 0x5bf   :  { %1920 = vmatpush1.bf16.msra.mxu0 %v3738_v6  ;;  %1963 = vmatpush1.bf16.msra.mxu1 %v3741_v7  ;;  %v4493_v7 = vld [vmem:[#allocation48_spill] sm:$0xff] }
 0x5c0   :  { %1921 = vmatprep.subr.bf16.mxu0 %v3744_v8  ;;  %1964 = vmatprep.subr.bf16.mxu1 %v3747_v9  ;;  %v4486_v9 = vld [vmem:[#allocation37_spill] sm:$0xff]  ;;  %v4492_v8 = vld [vmem:[#allocation47_spill] sm:$0xff] }
 0x5c3   :  { %1922 = vmatpush1.bf16.msra.mxu0 %v3750_v10  ;;  %1965 = vmatpush1.bf16.msra.mxu1 %v3753_v11  ;;  %v4487_v10 = vld [vmem:[#allocation38_spill] sm:$0xff]  ;;  %v4488_v11 = vld [vmem:[#allocation39_spill] sm:$0xff] }
 0x5c4   :  { %1923 = vmatprep.subr.bf16.mxu0 %v3756_v59  ;;  %1966 = vmatprep.subr.bf16.mxu1 %v3759_v17  ;;  %v4489_v59 = vld [vmem:[#allocation40_spill] sm:$0xff]  ;;  %v4490_v17 = vld [vmem:[#allocation41_spill] sm:$0xff] }
 0x5c7   :  { %1924 = vmatpush1.bf16.msra.mxu0 %v3762_v27  ;;  %1967 = vmatpush1.bf16.msra.mxu1 %v3765_v36  ;;  %v4491_v27 = vld [vmem:[#allocation42_spill] sm:$0xff] }
 0x5c8   :  { %1925 = vmatprep.subr.bf16.mxu0 %v3768_v28  ;;  %1968 = vmatprep.subr.bf16.mxu1 %v4474_v0 }
 0x5cb   :  { %1926 = vmatpush1.bf16.msra.mxu0 %v4475_v53  ;;  %1969 = vmatpush1.bf16.msra.mxu1 %v4485_v57 }
 0x5cc   :  { %1927 = vmatprep.subr.bf16.mxu0 %v4486_v9  ;;  %1970 = vmatprep.subr.bf16.mxu1 %v4487_v10 }
 0x5cf   :  { %1928 = vmatpush1.bf16.msra.mxu0 %v4488_v11  ;;  %1971 = vmatpush1.bf16.msra.mxu1 %v4489_v59 }
 0x5d0   :  { %2005 = vmatprep.subr.bf16.mxu0 %v4490_v17  ;;  %2048 = vmatprep.subr.bf16.mxu1 %v4491_v27 }
 0x685   :  { %v1807_v36 = vpop.f32.mrb[20].mxu0  ;;  %v1850_v28 = vpop.f32.mrb[20].mxu1 }
 0x686   :  { %v1859_v0 = vadd.f32 %v1807_v36, %v4492_v8  ;;  %v1861_v53 = vadd.f32 %v1850_v28, %v4493_v7  ;;  %v1809_v6 = vpop.f32.mrb[21].mxu0  ;;  %v1852_v57 = vpop.f32.mrb[21].mxu1 }
 0x687   :  { %v1860_v9 = vadd.f32 %v1809_v6, %v3452_v23  ;;  %v1811_v12 = vpop.f32.mrb[22].mxu0  ;;  %v1854_v10 = vpop.f32.mrb[22].mxu1  ;;  %v1862_v6 = vadd.f32 %v1852_v57, %v3456_v21 }
 0x688   :  { %vm1867_vm8 = vcmp.ge.f32.partialorder %v1859_v0, 0.0  ;;  %vm1869_vm9 = vcmp.ge.f32.partialorder %v1861_v53, 0.0  ;;  %v1863_v59 = vadd.f32 %v1811_v12, %v4492_v8  ;;  %v1865_v17 = vadd.f32 %v1854_v10, %v4493_v7  ;;  %v1813_v11 = vpop.f32.mrb[23].mxu0  ;;  %v1856_v27 = vpop.f32.mrb[23].mxu1 }
 0x689   :  { %v2555_v51 = vsel %vm1867_vm8, 1.0, %v4427_v31  ;;  %v2557_v36 = vsel %vm1869_vm9, 1.0, %v4427_v31  ;;  %vm1868_vm10 = vcmp.ge.f32.partialorder %v1860_v9, 0.0  ;;  %v1864_v12 = vadd.f32 %v1813_v11, %v3452_v23 }
 0x68a   :  { %v1893_v28 = vmul.f32 %v2557_v36, %v2555_v51  ;;  %v2556_v50 = vsel %vm1868_vm10, 1.0, %v4427_v31  ;;  %vm1871_vm11 = vcmp.ge.f32.partialorder %v1863_v59, 0.0  ;;  %vm1873_vm12 = vcmp.ge.f32.partialorder %v1865_v17, 0.0  ;;  %v4506_v36 = vld [vmem:[#allocation32_spill] sm:$0xff] }
 0x68b   :  { %v1891_v0 = vmul.f32 %v2556_v50, %v3932_v33  ;;  %v2559_v53 = vsel %vm1871_vm11, 1.0, %v4427_v31  ;;  %v2561_v10 = vsel %vm1873_vm12, 1.0, %v4427_v31  ;;  %v1866_v7 = vadd.f32 %v1856_v27, %v3456_v21 }
 0x68c   :  { %v1894_v9 = vmul.f32 %v2561_v10, %v2559_v53  ;;  %vm1872_vm13 = vcmp.ge.f32.partialorder %v1864_v12, 0.0  ;;  %vm1870_vm14 = vcmp.ge.f32.partialorder %v1862_v6, 0.0  ;;  %v4508_v6 = vld [vmem:[#allocation34_spill] sm:$0xff]  ;;  %v4510_v53 = vld [vmem:[#allocation36_spill] sm:$0xff]  ;;  %v4511_v12 = vld [vmem:[#allocation37_spill] sm:$0xff] }
 0x68d   :  { %v4056_v8 = vadd.f32 %v1893_v28, %v1891_v0  ;;  %v2560_v51 = vsel %vm1872_vm13, 1.0, %v4427_v31  ;;  %vm1874_vm15 = vcmp.ge.f32.partialorder %v1866_v7, 0.0  ;;  %v2558_v17 = vsel %vm1870_vm14, 1.0, %v4427_v31  ;;  %v2825_v7 = vld [vmem:[#allocation4 + $0x30] sm:$0xff]   ;;  %v4507_v28 = vld [vmem:[#allocation33_spill] sm:$0xff]  ;;  %v4509_v0 = vld [vmem:[#allocation35_spill] sm:$0xff] }
 0x68e   :  { %v1892_v59 = vmul.f32 %v2560_v51, %v3936_v25  ;;  %v2562_v11 = vsel %vm1874_vm15, 1.0, %v4427_v31  ;;  %v4505_v25 = vld [vmem:[#allocation31_spill] sm:$0xff]  ;;  %v4512_v10 = vld [vmem:[#allocation38_spill] sm:$0xff]  ;;  %v4514_v51 = vld [vmem:[#allocation40_spill] sm:$0xff] }
 0x68f   :  { %v1897_v33 = vmul.f32 %v2558_v17, %v4056_v8  ;;  %v4516_v17 = vld [vmem:[#allocation42_spill] sm:$0xff] }
 0x690   :  { %v4060_v50 = vadd.f32 %v1894_v9, %v1892_v59  ;;  %v4513_v9 = vld [vmem:[#allocation39_spill] sm:$0xff]  ;;  %v4515_v59 = vld [vmem:[#allocation41_spill] sm:$0xff] }
 0x692   :  { %v1898_v27 = vmul.f32 %v2562_v11, %v4060_v50 }
 0x694   :  { %v1899_v57 = vpack.c.bf16 %v1898_v27, %v1897_v33  ;;  %v4517_v27 = vld [vmem:[#allocation47_spill] sm:$0xff] }
 0x696   :  { %2632 = vst [vmem:[#allocation13 + $0x28] sm:$0xff] %v1899_v57   ;;  %1946 = vmatmul.mubr.bf16.vlgmr.msra.gmra.mrb[24].mxu0 %v1899_v57  ;;  %1989 = vmatmul.mubr.bf16.vlgmr.msra.gmra.mrb[24].mxu1 %v1899_v57 }
 0x697   :  { %2006 = vmatpush1.bf16.msra.mxu0 %v3818_v1  ;;  %2049 = vmatpush1.bf16.msra.mxu1 %v3821_v18 }
 0x698   :  { %2007 = vmatprep.subr.bf16.mxu0 %v3824_v26  ;;  %2050 = vmatprep.subr.bf16.mxu1 %v3827_v2 }
 0x699   :  { %2037 = vmatprep.mubr.bf16.mxu0 %v4399_v34  ;;  %2080 = vmatprep.mubr.bf16.mxu1 %v4399_v34 }
 0x69b   :  { %2008 = vmatpush1.bf16.msra.mxu0 %v3832_v5  ;;  %2051 = vmatpush1.bf16.msra.mxu1 %v3835_v3 }
 0x69c   :  { %2009 = vmatprep.subr.bf16.mxu0 %v3838_v4  ;;  %2052 = vmatprep.subr.bf16.mxu1 %v3841_v32 }
 0x69f   :  { %2010 = vmatpush1.bf16.msra.mxu0 %v3844_v20  ;;  %2053 = vmatpush1.bf16.msra.mxu1 %v3847_v19 }
 0x6a0   :  { %2011 = vmatprep.subr.bf16.mxu0 %v3850_v22  ;;  %2054 = vmatprep.subr.bf16.mxu1 %v3853_v30 }
 0x6a3   :  { %2012 = vmatpush1.bf16.msra.mxu0 %v3856_v16  ;;  %2055 = vmatpush1.bf16.msra.mxu1 %v3859_v24 }
 0x6a4   :  { %2013 = vmatprep.subr.bf16.mxu0 %v3958_v13  ;;  %2056 = vmatprep.subr.bf16.mxu1 %v3961_v15 }
 0x6a7   :  { %2014 = vmatpush1.bf16.msra.mxu0 %v3964_v62  ;;  %2057 = vmatpush1.bf16.msra.mxu1 %v3967_v63 }
 0x6a8   :  { %2015 = vmatprep.subr.bf16.mxu0 %v3970_v38  ;;  %2058 = vmatprep.subr.bf16.mxu1 %v3973_v37 }
 0x6ab   :  { %2016 = vmatpush1.bf16.msra.mxu0 %v3976_v29  ;;  %2059 = vmatpush1.bf16.msra.mxu1 %v3979_v58 }
 0x6ac   :  { %2017 = vmatprep.subr.bf16.mxu0 %v3982_v52  ;;  %2060 = vmatprep.subr.bf16.mxu1 %v3985_v14 }
 0x6af   :  { %2018 = vmatpush1.bf16.msra.mxu0 %v3988_v55  ;;  %2061 = vmatpush1.bf16.msra.mxu1 %v3991_v60 }
 0x6b0   :  { %2019 = vmatprep.subr.bf16.mxu0 %v3994_v54  ;;  %2062 = vmatprep.subr.bf16.mxu1 %v3997_v56 }
 0x6b3   :  { %2020 = vmatpush1.bf16.msra.mxu0 %v4000_v61  ;;  %2063 = vmatpush1.bf16.msra.mxu1 %v4003_v35 }
 0x6b4   :  { %2145 = vmatprep.subr.bf16.mxu0 %v3694_v39  ;;  %2188 = vmatprep.subr.bf16.mxu1 %v3697_v40  ;;  %v4494_v39 = vld [vmem:[#allocation45_spill] sm:$0xff]  ;;  %v4495_v40 = vld [vmem:[#allocation46_spill] sm:$0xff] }
 0x6b6   :  { %2038 = vmatmul.mubr.bf16.vlgmr.msra.gmra.mrb[24].mxu0 %v2825_v7  ;;  %2081 = vmatmul.mubr.bf16.vlgmr.msra.gmra.mrb[24].mxu1 %v2825_v7  ;;  %v4518_v7 = vld [vmem:[#allocation48_spill] sm:$0xff] }
 0x6b7   :  { %2146 = vmatpush1.bf16.msra.mxu0 %v3700_v41  ;;  %2189 = vmatpush1.bf16.msra.mxu1 %v3703_v42  ;;  %v4496_v41 = vld [vmem:[#allocation22_spill] sm:$0xff]  ;;  %v4497_v42 = vld [vmem:[#allocation23_spill] sm:$0xff] }
 0x6b8   :  { %2147 = vmatprep.subr.bf16.mxu0 %v3706_v43  ;;  %2190 = vmatprep.subr.bf16.mxu1 %v3709_v44  ;;  %v4498_v43 = vld [vmem:[#allocation24_spill] sm:$0xff]  ;;  %v4499_v44 = vld [vmem:[#allocation25_spill] sm:$0xff] }
 0x6b9   :  { %2177 = vmatprep.mubr.bf16.mxu0 %v4399_v34  ;;  %2220 = vmatprep.mubr.bf16.mxu1 %v4399_v34 }
 0x6bb   :  { %2148 = vmatpush1.bf16.msra.mxu0 %v3714_v45  ;;  %2191 = vmatpush1.bf16.msra.mxu1 %v3717_v46  ;;  %v4500_v45 = vld [vmem:[#allocation26_spill] sm:$0xff]  ;;  %v4501_v46 = vld [vmem:[#allocation27_spill] sm:$0xff] }
 0x6bc   :  { %2149 = vmatprep.subr.bf16.mxu0 %v3720_v47  ;;  %2192 = vmatprep.subr.bf16.mxu1 %v3723_v48  ;;  %v4502_v47 = vld [vmem:[#allocation28_spill] sm:$0xff]  ;;  %v4503_v48 = vld [vmem:[#allocation29_spill] sm:$0xff] }
 0x6bf   :  { %2150 = vmatpush1.bf16.msra.mxu0 %v3726_v49  ;;  %2193 = vmatpush1.bf16.msra.mxu1 %v4494_v39  ;;  %v4504_v49 = vld [vmem:[#allocation30_spill] sm:$0xff] }
 0x6c0   :  { %2151 = vmatprep.subr.bf16.mxu0 %v4495_v40  ;;  %2194 = vmatprep.subr.bf16.mxu1 %v4496_v41 }
 0x6c3   :  { %2152 = vmatpush1.bf16.msra.mxu0 %v4497_v42  ;;  %2195 = vmatpush1.bf16.msra.mxu1 %v4498_v43 }
 0x6c4   :  { %2153 = vmatprep.subr.bf16.mxu0 %v4499_v44  ;;  %2196 = vmatprep.subr.bf16.mxu1 %v4500_v45 }
 0x6c7   :  { %2154 = vmatpush1.bf16.msra.mxu0 %v4501_v46  ;;  %2197 = vmatpush1.bf16.msra.mxu1 %v4502_v47 }
 0x6c8   :  { %2155 = vmatprep.subr.bf16.mxu0 %v4503_v48  ;;  %2198 = vmatprep.subr.bf16.mxu1 %v4504_v49 }
 0x6cb   :  { %2156 = vmatpush1.bf16.msra.mxu0 %v4505_v25  ;;  %2199 = vmatpush1.bf16.msra.mxu1 %v4506_v36 }
 0x6cc   :  { %2157 = vmatprep.subr.bf16.mxu0 %v4507_v28  ;;  %2200 = vmatprep.subr.bf16.mxu1 %v4508_v6 }
 0x6cf   :  { %2158 = vmatpush1.bf16.msra.mxu0 %v4509_v0  ;;  %2201 = vmatpush1.bf16.msra.mxu1 %v4510_v53 }
 0x6d0   :  { %2159 = vmatprep.subr.bf16.mxu0 %v4511_v12  ;;  %2202 = vmatprep.subr.bf16.mxu1 %v4512_v10 }
 0x6d3   :  { %2160 = vmatpush1.bf16.msra.mxu0 %v4513_v9  ;;  %2203 = vmatpush1.bf16.msra.mxu1 %v4514_v51 }
 0x6d4   :  { %2237 = vmatprep.subr.bf16.mxu0 %v4515_v59  ;;  %2280 = vmatprep.subr.bf16.mxu1 %v4516_v17 }
 0x789   :  { %v2039_v11 = vpop.f32.mrb[24].mxu0  ;;  %v2082_v33 = vpop.f32.mrb[24].mxu1 }
 0x78a   :  { %v2091_v57 = vadd.f32 %v2039_v11, %v4517_v27  ;;  %v2093_v39 = vadd.f32 %v2082_v33, %v4518_v7  ;;  %v2041_v40 = vpop.f32.mrb[25].mxu0  ;;  %v2084_v41 = vpop.f32.mrb[25].mxu1 }
 0x78b   :  { %v2092_v42 = vadd.f32 %v2041_v40, %v3452_v23  ;;  %v2043_v43 = vpop.f32.mrb[26].mxu0  ;;  %v2086_v44 = vpop.f32.mrb[26].mxu1  ;;  %v2094_v6 = vadd.f32 %v2084_v41, %v3456_v21 }
 0x78c   :  { %vm2099_vm0 = vcmp.ge.f32.partialorder %v2091_v57, 0.0  ;;  %vm2101_vm1 = vcmp.ge.f32.partialorder %v2093_v39, 0.0  ;;  %v2095_v45 = vadd.f32 %v2043_v43, %v4517_v27  ;;  %v2097_v46 = vadd.f32 %v2086_v44, %v4518_v7  ;;  %v2045_v47 = vpop.f32.mrb[27].mxu0  ;;  %v2088_v48 = vpop.f32.mrb[27].mxu1 }
 0x78d   :  { %v2566_v49 = vsel %vm2099_vm0, 1.0, %v4427_v31  ;;  %v2568_v25 = vsel %vm2101_vm1, 1.0, %v4427_v31  ;;  %vm2100_vm2 = vcmp.ge.f32.partialorder %v2092_v42, 0.0  ;;  %v2096_v12 = vadd.f32 %v2045_v47, %v3452_v23 }
 0x78e   :  { %v2125_v36 = vmul.f32 %v2568_v25, %v2566_v49  ;;  %v2567_v28 = vsel %vm2100_vm2, 1.0, %v4427_v31  ;;  %vm2103_vm3 = vcmp.ge.f32.partialorder %v2095_v45, 0.0  ;;  %vm2105_vm4 = vcmp.ge.f32.partialorder %v2097_v46, 0.0 }
 0x78f   :  { %v2123_v0 = vmul.f32 %v2567_v28, %v4056_v8  ;;  %v2570_v53 = vsel %vm2103_vm3, 1.0, %v4427_v31  ;;  %v2572_v10 = vsel %vm2105_vm4, 1.0, %v4427_v31  ;;  %v2098_v9 = vadd.f32 %v2088_v48, %v3456_v21 }
 0x790   :  { %v2126_v59 = vmul.f32 %v2572_v10, %v2570_v53  ;;  %vm2104_vm5 = vcmp.ge.f32.partialorder %v2096_v12, 0.0  ;;  %vm2102_vm6 = vcmp.ge.f32.partialorder %v2094_v6, 0.0 }
 0x791   :  { %v4148_v51 = vadd.f32 %v2125_v36, %v2123_v0  ;;  %v2571_v17 = vsel %vm2104_vm5, 1.0, %v4427_v31  ;;  %vm2106_vm7 = vcmp.ge.f32.partialorder %v2098_v9, 0.0  ;;  %v2569_v33 = vsel %vm2102_vm6, 1.0, %v4427_v31 }
 0x792   :  { %v2124_v11 = vmul.f32 %v2571_v17, %v4060_v50  ;;  %v2573_v57 = vsel %vm2106_vm7, 1.0, %v4427_v31 }
 0x793   :  { %v2129_v39 = vmul.f32 %v2569_v33, %v4148_v51 }
 0x794   :  { %v4152_v8 = vadd.f32 %v2126_v59, %v2124_v11 }
 0x796   :  { %v2130_v40 = vmul.f32 %v2573_v57, %v4152_v8 }
 0x798   :  { %v2131_v41 = vpack.c.bf16 %v2130_v40, %v2129_v39 }
 0x79a   :  { %2637 = vst [vmem:[#allocation13 + $0x30] sm:$0xff] %v2131_v41   ;;  %2178 = vmatmul.mubr.bf16.vlgmr.msra.gmra.mrb[28].mxu0 %v2131_v41  ;;  %2221 = vmatmul.mubr.bf16.vlgmr.msra.gmra.mrb[28].mxu1 %v2131_v41 }
 0x79b   :  { %2238 = vmatpush1.bf16.msra.mxu0 %v3818_v1  ;;  %2281 = vmatpush1.bf16.msra.mxu1 %v3821_v18 }
 0x79c   :  { %2239 = vmatprep.subr.bf16.mxu0 %v3824_v26  ;;  %2282 = vmatprep.subr.bf16.mxu1 %v3827_v2 }
 0x79d   :  { %2269 = vmatprep.mubr.bf16.mxu0 %v4399_v34  ;;  %2312 = vmatprep.mubr.bf16.mxu1 %v4399_v34  ;;  %v2826_v34 = vld [vmem:[#allocation4 + $0x38] sm:$0xff]  }
 0x79f   :  { %2240 = vmatpush1.bf16.msra.mxu0 %v3832_v5  ;;  %2283 = vmatpush1.bf16.msra.mxu1 %v3835_v3 }
 0x7a0   :  { %2241 = vmatprep.subr.bf16.mxu0 %v3838_v4  ;;  %2284 = vmatprep.subr.bf16.mxu1 %v3841_v32 }
 0x7a3   :  { %2242 = vmatpush1.bf16.msra.mxu0 %v3844_v20  ;;  %2285 = vmatpush1.bf16.msra.mxu1 %v3847_v19 }
 0x7a4   :  { %2243 = vmatprep.subr.bf16.mxu0 %v3850_v22  ;;  %2286 = vmatprep.subr.bf16.mxu1 %v3853_v30 }
 0x7a7   :  { %2244 = vmatpush1.bf16.msra.mxu0 %v3856_v16  ;;  %2287 = vmatpush1.bf16.msra.mxu1 %v3859_v24 }
 0x7a8   :  { %2245 = vmatprep.subr.bf16.mxu0 %v3958_v13  ;;  %2288 = vmatprep.subr.bf16.mxu1 %v3961_v15 }
 0x7ab   :  { %2246 = vmatpush1.bf16.msra.mxu0 %v3964_v62  ;;  %2289 = vmatpush1.bf16.msra.mxu1 %v3967_v63 }
 0x7ac   :  { %2247 = vmatprep.subr.bf16.mxu0 %v3970_v38  ;;  %2290 = vmatprep.subr.bf16.mxu1 %v3973_v37 }
 0x7af   :  { %2248 = vmatpush1.bf16.msra.mxu0 %v3976_v29  ;;  %2291 = vmatpush1.bf16.msra.mxu1 %v3979_v58 }
 0x7b0   :  { %2249 = vmatprep.subr.bf16.mxu0 %v3982_v52  ;;  %2292 = vmatprep.subr.bf16.mxu1 %v3985_v14 }
 0x7b3   :  { %2250 = vmatpush1.bf16.msra.mxu0 %v3988_v55  ;;  %2293 = vmatpush1.bf16.msra.mxu1 %v3991_v60 }
 0x7b4   :  { %2251 = vmatprep.subr.bf16.mxu0 %v3994_v54  ;;  %2294 = vmatprep.subr.bf16.mxu1 %v3997_v56 }
 0x7b7   :  { %2252 = vmatpush1.bf16.msra.mxu0 %v4000_v61  ;;  %2295 = vmatpush1.bf16.msra.mxu1 %v4003_v35 }
 0x7ba   :  { %2270 = vmatmul.mubr.bf16.vlgmr.msra.gmra.mrb[28].mxu0 %v2826_v34  ;;  %2313 = vmatmul.mubr.bf16.vlgmr.msra.gmra.mrb[28].mxu1 %v2826_v34 }
 0x88d   :  { %v2271_v1 = vpop.f32.mrb[28].mxu0  ;;  %v2314_v18 = vpop.f32.mrb[28].mxu1 }
 0x88e   :  { %v2323_v26 = vadd.f32 %v2271_v1, %v4517_v27  ;;  %v2325_v2 = vadd.f32 %v2314_v18, %v4518_v7  ;;  %v2273_v5 = vpop.f32.mrb[29].mxu0  ;;  %v2316_v3 = vpop.f32.mrb[29].mxu1 }
 0x88f   :  { %v2324_v4 = vadd.f32 %v2273_v5, %v3452_v23  ;;  %v2326_v32 = vadd.f32 %v2316_v3, %v3456_v21  ;;  %v2275_v20 = vpop.f32.mrb[30].mxu0  ;;  %v2318_v19 = vpop.f32.mrb[30].mxu1 }
 0x890   :  { %vm2331_vm8 = vcmp.ge.f32.partialorder %v2323_v26, 0.0  ;;  %vm2333_vm9 = vcmp.ge.f32.partialorder %v2325_v2, 0.0  ;;  %v2327_v22 = vadd.f32 %v2275_v20, %v4517_v27  ;;  %v2329_v30 = vadd.f32 %v2318_v19, %v4518_v7  ;;  %v2277_v16 = vpop.f32.mrb[31].mxu0  ;;  %v2320_v24 = vpop.f32.mrb[31].mxu1 }
 0x891   :  { %v2577_v13 = vsel %vm2331_vm8, 1.0, %v4427_v31  ;;  %v2579_v15 = vsel %vm2333_vm9, 1.0, %v4427_v31  ;;  %vm2332_vm10 = vcmp.ge.f32.partialorder %v2324_v4, 0.0  ;;  %vm2334_vm11 = vcmp.ge.f32.partialorder %v2326_v32, 0.0 }
 0x892   :  { %v2357_v62 = vmul.f32 %v2579_v15, %v2577_v13  ;;  %v2578_v63 = vsel %vm2332_vm10, 1.0, %v4427_v31  ;;  %vm2335_vm12 = vcmp.ge.f32.partialorder %v2327_v22, 0.0  ;;  %vm2337_vm13 = vcmp.ge.f32.partialorder %v2329_v30, 0.0 }
 0x893   :  { %v2355_v38 = vmul.f32 %v2578_v63, %v4148_v51  ;;  %v2581_v37 = vsel %vm2335_vm12, 1.0, %v4427_v31  ;;  %v2328_v29 = vadd.f32 %v2277_v16, %v3452_v23  ;;  %v2583_v58 = vsel %vm2337_vm13, 1.0, %v4427_v31 }
 0x894   :  { %v2330_v52 = vadd.f32 %v2320_v24, %v3456_v21  ;;  %v2358_v55 = vmul.f32 %v2583_v58, %v2581_v37  ;;  %v2580_v60 = vsel %vm2334_vm11, 1.0, %v4427_v31 }
 0x895   :  { %v2359_v14 = vadd.f32 %v2357_v62, %v2355_v38  ;;  %vm2336_vm14 = vcmp.ge.f32.partialorder %v2328_v29, 0.0 }
 0x896   :  { %v2582_v54 = vsel %vm2336_vm14, 1.0, %v4427_v31  ;;  %vm2338_vm15 = vcmp.ge.f32.partialorder %v2330_v52, 0.0 }
 0x897   :  { %v2361_v56 = vmul.f32 %v2580_v60, %v2359_v14  ;;  %2383 = vst [vmem:[#allocation16] sm:$0xff] %v2359_v14  ;;  %v2356_v61 = vmul.f32 %v2582_v54, %v4152_v8  ;;  %v2584_v21 = vsel %vm2338_vm15, 1.0, %v4427_v31 }
 0x899   :  { %2381 = vst [vmem:[#allocation14] sm:$0xff] %v2361_v56  ;;  %v2360_v23 = vadd.f32 %v2358_v55, %v2356_v61 }
 0x89b   :  { %v2362_v35 = vmul.f32 %v2584_v21, %v2360_v23  ;;  %2384 = vst [vmem:[#allocation16 + $0x8] sm:$0xff] %v2360_v23 }
 0x89d   :  { %v2641_v50 = vpack.c.bf16 %v2362_v35, %v2361_v56  ;;  %2382 = vst [vmem:[#allocation14 + $0x8] sm:$0xff] %v2362_v35 }
 0x89e   :  { %3012 = shalt.err (!%p3009_p2)
}
 0x89f   :  { %s3013_s0 = scalar_lea.hbm %s4274_s7, 256 }
 0x8a0   :  { %p3014_p3 = scmp.ne.s32.totalorder %s4274_s7, %s3013_s0  ;;  %p3017_p4 = scmp.lt.u32.totalorder %s3013_s0, %s4274_s7 }
 0x8a2   :  { %p3019_p5 = pnand %p3017_p4, %p3014_p3 }
 0x8a4   :  { %3022 = shalt.err (!%p3019_p5)
}
 0x8a5   :  { %2408 = dma.vmem_to_hbm [thread:$0]  %s2403_s28, 256, %s4274_s7, [#allocation15], %s3078_s15, %s3078_s15, %s3079_s16   ;;  %2642 = vst [vmem:[#allocation13 + $0x38] sm:$0xff] %v2641_v50  }
 0x8a6   :  { %s3023_s24 = scalar_lea.vmem %s4208_s9, 256  ;;  %p3028_p7 = scmp.lt.s32.totalorder %s4208_s9, %s4208_s9 }
 0x8a7   :  { %p3024_p6 = scmp.ne.s32.totalorder %s4208_s9, %s3023_s24  ;;  %p3029_p8 = scmp.lt.s32.totalorder %s3023_s24, %s3023_s24 }
 0x8a9   :  { %p3030_p9 = por %p3029_p8, %p3028_p7 }
 0x8ab   :  { %p3031_p10 = pnand %p3030_p9, %p3024_p6 }
 0x8ad   :  { %3034 = shalt.err (!%p3031_p10)
}
 0x8ae   :  { %s3035_s30 = scalar_lea.hbm %s4275_s8, 256 }
 0x8af   :  { %p3036_p11 = scmp.ne.s32.totalorder %s4275_s8, %s3035_s30  ;;  %p3039_p12 = scmp.lt.u32.totalorder %s3035_s30, %s4275_s8 }
 0x8b1   :  { %p3041_p13 = pnand %p3039_p12, %p3036_p11 }
 0x8b3   :  { %3044 = shalt.err (!%p3041_p13)
}
 0x8b4   :  { %2420 = dma.vmem_to_hbm [thread:$0]  %s4208_s9, 256, %s4275_s8, [#allocation15], %s3078_s15, %s3078_s15, %s3079_s16  }
 0x8b5   :  { %s3045_s28 = scalar_lea.vmem %s4210_s12, 1024  ;;  %p3050_p1 = scmp.lt.s32.totalorder %s4210_s12, %s4210_s12 }
 0x8b6   :  { %p3046_p0 = scmp.ne.s32.totalorder %s4210_s12, %s3045_s28  ;;  %p3051_p2 = scmp.lt.s32.totalorder %s3045_s28, %s3045_s28 }
 0x8b8   :  { %p3052_p3 = por %p3051_p2, %p3050_p1 }
 0x8ba   :  { %p3053_p4 = pnand %p3052_p3, %p3046_p0 }
 0x8bc   :  { %3056 = shalt.err (!%p3053_p4)
}
 0x8bd   :  { %s3057_s13 = scalar_lea.hbm %s4273_s6, 1024 }
 0x8be   :  { %p3058_p5 = scmp.ne.s32.totalorder %s4273_s6, %s3057_s13  ;;  %p3061_p6 = scmp.lt.u32.totalorder %s3057_s13, %s4273_s6 }
 0x8c0   :  { %p3063_p7 = pnand %p3061_p6, %p3058_p5 }
 0x8c2   :  { %3066 = shalt.err (!%p3063_p7)
}
 0x8c3   :  { %2396 = dma.vmem_to_hbm [thread:$0]  %s4210_s12, 1024, %s4273_s6, [#allocation6], %s3084_s3, %s3084_s3, %s3085_s20  }
 0x8c4   :  { %3073 = dma.done.wait [#allocation6], 1024  }
 0x8c5   :  { %3074 = vsyncadd [#allocation6], 4294966272 }
 0x8c6   :  { %3075 = dma.done.wait [#allocation15], 512  }
 0x8c7   :  { %3076 = vsyncadd [#allocation15], 4294966784 }
 0x8c8   :  { %2430 = vsyncpa [#allocation5], 1 }
 0x8c9   :  { %2431 = vsyncpa [#allocation8], 1 }
 0x8ca   :  { %2432 = vsyncpa [#allocation11], 1 }
 0x8cb   :  { %2433 = vsyncpa [#allocation6], 1 }
 0x8cc   :  { %2434 = vsyncpa [#allocation15], 1 }

</bundles_post_ra>
